<compile_context>
chip_gen: v6e
topology: v6e:2x2x1
jax: 0.10.0
libtpu: 0.0.40
codegen_flags: <defaults>
</compile_context>

<pallas_src>
import functools

import jax
import jax.numpy as jnp
from jax.experimental import pallas as pl
from jax.experimental.pallas import tpu as pltpu


# -----------------------------------------------------------------------------
# helpers
# -----------------------------------------------------------------------------
def _round_up(x, m):
    return ((x + m - 1) // m) * m


def _tpu_generation():
    try:
        kind = jax.devices()[0].device_kind.lower()
    except Exception:
        return 0
    for g in (7, 6, 5, 4):
        if f"v{g}" in kind:
            return g
    return 0


_MXU_DTYPES = None


def _probe_mxu_dtype(op_dtype, acc_dtype):
    """Compile + run a tiny Pallas matmul with the candidate operand dtype."""
    def k(a_ref, b_ref, o_ref):
        o_ref[...] = jnp.dot(a_ref[...], b_ref[...],
                             preferred_element_type=acc_dtype).astype(jnp.float32)
    try:
        f = pl.pallas_call(k, out_shape=jax.ShapeDtypeStruct((128, 128), jnp.float32))
        a = jnp.ones((128, 128), op_dtype)
        b = jnp.ones((128, 128), op_dtype)
        out = jax.block_until_ready(f(a, b))
        return bool(jnp.all(out == 128.0))
    except Exception:
        return False


def _select_mxu_dtypes():
    """Pick (operand dtype, accumulator dtype) for the +-1 matmul, per chip.

    Must be called OUTSIDE any jit trace (the probe executes eagerly).
    """
    global _MXU_DTYPES
    if _MXU_DTYPES is not None:
        return _MXU_DTYPES
    gen = _tpu_generation()
    candidates = []
    if gen in (5, 6):
        candidates.append((jnp.int8, jnp.int32))            # v5e/v6e integer MXU
    elif gen >= 7:
        fp8 = getattr(jnp, "float8_e4m3fn", None)
        if fp8 is not None:
            candidates.append((fp8, jnp.float32))            # v7x fp8 MXU
    for op_dt, acc_dt in candidates:
        if _probe_mxu_dtype(op_dt, acc_dt):
            _MXU_DTYPES = (op_dt, acc_dt)
            return _MXU_DTYPES
    _MXU_DTYPES = (jnp.bfloat16, jnp.float32)                # always-safe fallback
    return _MXU_DTYPES


def _row_tiling(R, gen):
    """tm is always a power-of-two multiple of 128; R padded to a multiple of tm."""
    tm = 256 if gen >= 7 else 512        # smaller on v7x (64 MiB VMEM, 2 TCs)
    while tm > 128 and R <= tm // 2:
        tm //= 2
    return _round_up(R, tm), tm


def _col_tiling(N):
    Np = _round_up(N, 128)
    if Np <= 1024:
        return Np, Np                    # single column tile -> patches stream once
    return _round_up(N, 512), 512


def _k_tiling(K):
    Kp = _round_up(K, 128)
    if Kp <= 2048:
        return Kp, Kp
    return _round_up(K, 2048), 2048


# -----------------------------------------------------------------------------
# Pallas kernel: tiled binary-conv matmul + BN + residual + RPReLU epilogue
# -----------------------------------------------------------------------------
def _fused_bconv_kernel(p_ref, w_ref, par_ref, sc_ref, o_ref, acc_ref, *,
                        tk, w_resident, acc_dtype):
    """p_ref : (tm, tk) +-1 binarized patches (0 in padding)
       w_ref : (K_pad, tn) [resident] or (tk, tn) [streamed] +-1 sign(W)
       par_ref: (8, tn) f32 packed per-channel params
                rows: 0=scale(alpha*bn_w/sqrt(var+eps)) 1=bias 2=gamma 3=beta 4=zeta
       sc_ref: (tm, tn) f32 shortcut branch
       o_ref : (tm, tn) f32 output
       acc_ref: (tm, tn) accumulator scratch (int32 or f32)
    """
    k = pl.program_id(2)

    @pl.when(k == 0)
    def _():
        acc_ref[...] = jnp.zeros_like(acc_ref)

    if w_resident:
        w = w_ref[pl.ds(pl.multiple_of(k * tk, tk), tk), :]
    else:
        w = w_ref[...]
    acc_ref[...] += jnp.dot(p_ref[...], w, preferred_element_type=acc_dtype)

    @pl.when(k == pl.num_programs(2) - 1)
    def _():
        scale = par_ref[0:1, :]
        bias = par_ref[1:2, :]
        gamma = par_ref[2:3, :]
        beta = par_ref[3:4, :]
        zeta = par_ref[4:5, :]
        out = acc_ref[...].astype(jnp.float32) * scale + bias + sc_ref[...]
        t = out - gamma                                       # RPReLU
        o_ref[...] = (jnp.where(t > 0.0, t, beta * t) + zeta).astype(o_ref.dtype)


def fused_bconv(patches, wb, scale, bias, gamma, beta, zeta, shortcut):
    """patches (R, K) +-1, wb (K, N) +-1, per-channel params (N,), shortcut (R, N)."""
    R, K = patches.shape
    _, N = wb.shape
    op_dtype, acc_dtype = _select_mxu_dtypes()
    op_bytes = jnp.dtype(op_dtype).itemsize
    acc_bytes = jnp.dtype(acc_dtype).itemsize
    gen = _tpu_generation()

    R_pad, tm = _row_tiling(R, gen)
    K_pad, tk = _k_tiling(K)
    N_pad, tn = _col_tiling(N)

    # single fused pad per operand; padded rows/cols are zero (exact no-ops in the
    # +-1 matmul) and are sliced away afterwards.
    p = jnp.pad(patches, ((0, R_pad - R), (0, K_pad - K)))
    w = jnp.pad(wb, ((0, K_pad - K), (0, N_pad - N)))
    sc = jnp.pad(shortcut.astype(jnp.float32), ((0, R_pad - R), (0, N_pad - N)))

    par = jnp.zeros((8, N_pad), jnp.float32)
    par = par.at[0, :N].set(scale.astype(jnp.float32))
    par = par.at[1, :N].set(bias.astype(jnp.float32))
    par = par.at[2, :N].set(gamma.astype(jnp.float32))
    par = par.at[3, :N].set(beta.astype(jnp.float32))
    par = par.at[4, :N].set(zeta.astype(jnp.float32))

    # Keep the whole (K_pad, tn) weight slab VMEM-resident across row tiles when
    # it is small enough; otherwise stream (tk, tn) blocks over K.
    w_resident = (K_pad * tn * op_bytes) <= 8 * 1024 * 1024
    if w_resident:
        w_spec = pl.BlockSpec((K_pad, tn), lambda i, j, k: (0, j))
        w_blk_rows = K_pad
    else:
        w_spec = pl.BlockSpec((tk, tn), lambda i, j, k: (k, j))
        w_blk_rows = tk

    grid = (R_pad // tm, N_pad // tn, K_pad // tk)

    # VMEM working set (double-buffered operands + accumulator) -> vmem limit.
    ws = (2 * tm * tk * op_bytes            # patches
          + 2 * w_blk_rows * tn * op_bytes  # weights
          + 2 * tm * tn * 4                 # shortcut
          + 2 * tm * tn * 4                 # output
          + tm * tn * acc_bytes             # accumulator scratch
          + 2 * 8 * tn * 4)                 # packed params
    phys_vmem = (64 if gen >= 7 else 128) * 1024 * 1024
    vmem_limit = int(min(phys_vmem // 2, max(2 * ws, 16 * 1024 * 1024)))

    cost = pl.CostEstimate(
        flops=2 * R_pad * K_pad * N_pad,
        transcendentals=0,
        bytes_accessed=(R_pad * K_pad * op_bytes + K_pad * N_pad * op_bytes
                        + 2 * R_pad * N_pad * 4 + 8 * N_pad * 4),
    )

    kernel = functools.partial(_fused_bconv_kernel, tk=tk,
                               w_resident=w_resident, acc_dtype=acc_dtype)

    out = pl.pallas_call(
        kernel,
        grid=grid,
        in_specs=[
            pl.BlockSpec((tm, tk), lambda i, j, k: (i, k)),   # patches (streamed over K)
            w_spec,                                           # weights (VMEM-resident)
            pl.BlockSpec((8, tn), lambda i, j, k: (0, j)),    # packed per-channel params
            pl.BlockSpec((tm, tn), lambda i, j, k: (i, j)),   # shortcut (epilogue only)
        ],
        out_specs=pl.BlockSpec((tm, tn), lambda i, j, k: (i, j)),
        out_shape=jax.ShapeDtypeStruct((R_pad, N_pad), jnp.float32),
        scratch_shapes=[pltpu.VMEM((tm, tn), acc_dtype)],
        compiler_params=pltpu.CompilerParams(
            dimension_semantics=("parallel", "parallel", "arbitrary"),
            vmem_limit_bytes=vmem_limit),
        cost_estimate=cost,
    )(p, w, par, sc)

    return out[:R, :N]


# -----------------------------------------------------------------------------
# Binary block (JAX glue: fused binarize+im2col, weight sign, shortcut prep)
# -----------------------------------------------------------------------------
def binary_conv2d_bimatting(x, params, stride):
    """x: (B, H, W, Cin) NHWC float32 -> (B, Ho, Wo, Cout)."""
    B, H, W, Cin = x.shape
    Cout = params["w"].shape[-1]
    op_dtype, _ = _select_mxu_dtypes()

    # 1) binary activation fused into patch formation: +-1 (exact in int8/fp8/bf16)
    move = params["move"].reshape(1, 1, 1, Cin)
    xb = jnp.where(x + move >= 0.0, 1, -1).astype(op_dtype)
    # TODO(synk): torch.sign maps exact 0 -> 0; here 0 -> +1 (negligible in practice).

    # 2) im2col (zero pad=1, 3x3 kernel, given stride)
    Ho = (H - 1) // stride + 1
    Wo = (W - 1) // stride + 1
    xp = jnp.pad(xb, ((0, 0), (1, 1), (1, 1), (0, 0)))
    cols = []
    for kh in range(3):
        for kw in range(3):
            cols.append(xp[:, kh:kh + (Ho - 1) * stride + 1:stride,
                           kw:kw + (Wo - 1) * stride + 1:stride, :])
    patches = jnp.concatenate(cols, axis=-1).reshape(B * Ho * Wo, 9 * Cin)

    # 3) weight binarization: sign(W) (+-1 exact); alpha folded into the
    #    per-output-channel post-scale together with BatchNorm.
    w = params["w"]                                        # (3, 3, Cin, Cout)
    alpha = jnp.mean(jnp.abs(w), axis=(0, 1, 2))           # (Cout,)
    wb = jnp.where(w >= 0.0, 1, -1).astype(op_dtype).reshape(9 * Cin, Cout)

    # 4) folded BatchNorm (eval mode, running_mean=0, running_var=1)
    # TODO(synk): real checkpoints need scale=(alpha*bn_w)/sqrt(var+eps), bias=bn_b-mean*scale.
    eps = 1e-5
    scale = alpha * params["bn_w"] / jnp.sqrt(1.0 + eps)
    bias = params["bn_b"]

    # 5) shortcut branch
    if stride == 1 and Cin == Cout:
        sc = x.reshape(B * H * W, Cout)
    else:
        # TODO(synk): assumes H, W divisible by stride and Cout % Cin == 0.
        sp = x.reshape(B, Ho, stride, Wo, stride, Cin).mean(axis=(2, 4))
        rep = Cout // Cin
        sc = jnp.concatenate([sp] * rep, axis=-1).reshape(B * Ho * Wo, Cout)

    # 6) fused tiled matmul + BN + residual + RPReLU (Pallas kernel)
    out = fused_bconv(patches, wb, scale, bias,
                      params["gamma"], params["beta"], params["zeta"], sc)
    return out.reshape(B, Ho, Wo, Cout)


# -----------------------------------------------------------------------------
# Backbone
# -----------------------------------------------------------------------------
def _init_block_params(key, cin, cout):
    k = jax.random.split(key, 6)
    return dict(
        w=0.1 * jax.random.normal(k[0], (3, 3, cin, cout), jnp.float32),
        move=0.01 * jax.random.normal(k[1], (cin,), jnp.float32),
        bn_w=1.0 + 0.1 * jax.random.normal(k[2], (cout,), jnp.float32),
        bn_b=0.1 * jax.random.normal(k[3], (cout,), jnp.float32),
        gamma=0.01 * jax.random.normal(k[4], (cout,), jnp.float32),
        zeta=0.01 * jax.random.normal(k[5], (cout,), jnp.float32),
        beta=jnp.full((cout,), 0.25, jnp.float32),
    )


class BinaryResNetBiMattingPallas:
    def __init__(self, numC_input, num_layer=(2, 2, 2), num_channels=None,
                 stride=(2, 2, 2), backbone_output_ids=None, seed=0):
        assert len(num_layer) == len(stride)
        num_channels = ([numC_input * 2 ** (i + 1) for i in range(len(num_layer))]
                        if num_channels is None else num_channels)
        self.backbone_output_ids = (list(range(len(num_layer)))
                                    if backbone_output_ids is None
                                    else list(backbone_output_ids))
        # Resolve the MXU operand dtype ONCE, eagerly (outside any jit trace).
        _select_mxu_dtypes()
        key = jax.random.PRNGKey(seed)
        self.layers = []
        curr = numC_input
        bidx = 0
        for i in range(len(num_layer)):
            blocks = []
            # first block of the stage: stride[i], channel expansion
            key_b = jax.random.fold_in(key, bidx); bidx += 1
            blocks.append((_init_block_params(key_b, curr, num_channels[i]), stride[i]))
            curr = num_channels[i]
            for _ in range(num_layer[i] - 1):
                key_b = jax.random.fold_in(key, bidx); bidx += 1
                blocks.append((_init_block_params(key_b, curr, num_channels[i]), 1))
            self.layers.append(blocks)
        # JIT the whole forward so XLA fuses the layout glue around pallas_calls.
        self._forward = jax.jit(self._forward_impl)

    def _forward_impl(self, x_nchw):
        # PyTorch semantics: NCHW in, list of NCHW feature maps out.
        x = jnp.transpose(x_nchw, (0, 2, 3, 1)).astype(jnp.float32)  # -> NHWC
        feats = []
        for lid, layer in enumerate(self.layers):
            for params, s in layer:
                x = binary_conv2d_bimatting(x, params, s)
            if lid in self.backbone_output_ids:
                feats.append(jnp.transpose(x, (0, 3, 1, 2)))          # -> NCHW
        return feats

    def __call__(self, x_nchw):
        return self._forward(x_nchw)


# -----------------------------------------------------------------------------
if __name__ == "__main__":
    key = jax.random.PRNGKey(0)
    B, C, H, W = 2, 4, 16, 16
    x = jax.random.normal(key, (B, C, H, W), jnp.float32)

    model = BinaryResNetBiMattingPallas(numC_input=C)
    feats = model(x)
    feats = [jax.block_until_ready(f) for f in feats]

    expected = [(B, 2 * C, H // 2, W // 2),
                (B, 4 * C, H // 4, W // 4),
                (B, 8 * C, H // 8, W // 8)]
    assert [tuple(f.shape) for f in feats] == expected, \
        f"got {[f.shape for f in feats]}, want {expected}"
    assert all(bool(jnp.all(jnp.isfinite(f))) for f in feats)
    print("KERNEL_OK")
</pallas_src>

<mosaic_0001>
module attributes {stable_mosaic.version = 11 : i64} {
  func.func @_fused_bconv_kernel(%arg0: i32, %arg1: i32, %arg2: i32, %arg3: memref<128x128xbf16, #tpu.memory_space<vmem>>, %arg4: memref<128x128xbf16, #tpu.memory_space<vmem>>, %arg5: memref<8x128xf32, #tpu.memory_space<vmem>>, %arg6: memref<128x128xf32, #tpu.memory_space<vmem>>, %arg7: memref<128x128xf32, #tpu.memory_space<vmem>>, %arg8: memref<128x128xf32, #tpu.memory_space<vmem>>) attributes {dimension_semantics = [#tpu.dimension_semantics<parallel>, #tpu.dimension_semantics<parallel>, #tpu.dimension_semantics<arbitrary>], iteration_bounds = array<i64: 1, 1, 1>, scalar_prefetch = 0 : i64, scratch_operands = 1 : i64, tpu.core_type = #tpu.core_type<tc>, window_params = [{transform_indices = @transform_0, window_bounds = array<i64: 128, 128>}, {transform_indices = @transform_1, window_bounds = array<i64: 128, 128>}, {transform_indices = @transform_2, window_bounds = array<i64: 8, 128>}, {transform_indices = @transform_3, window_bounds = array<i64: 128, 128>}, {transform_indices = @transform_4, window_bounds = array<i64: 128, 128>}]} {
    %c0_i32 = arith.constant 0 : i32
    %0 = arith.cmpi eq, %arg2, %c0_i32 : i32
    %1 = arith.extui %0 : i1 to i32
    %c0_i32_0 = arith.constant 0 : i32
    %2 = arith.cmpi ne, %1, %c0_i32_0 : i32
    scf.if %2 {
      %cst_9 = arith.constant 0.000000e+00 : f32
      %15 = vector.broadcast %cst_9 : f32 to vector<128x128xf32>
      %c0_10 = arith.constant 0 : index
      %c0_11 = arith.constant 0 : index
      %16 = vector.load %arg8[%c0_10, %c0_11] : memref<128x128xf32, #tpu.memory_space<vmem>>, vector<128x128xf32>
      tpu.vector_store %arg8[%c0_10, %c0_11], %15 {strides = array<i32>} : memref<128x128xf32, #tpu.memory_space<vmem>>, vector<128x128xf32>,
    } else {
    }
    %c128_i32 = arith.constant 128 : i32
    %3 = arith.muli %arg2, %c128_i32 : i32
    %4 = tpu.assume_multiple %3, 128 : i32
    %5 = arith.index_cast %4 : i32 to index
    %c0 = arith.constant 0 : index
    %6 = vector.load %arg4[%5, %c0] : memref<128x128xbf16, #tpu.memory_space<vmem>>, vector<128x128xbf16>
    %c0_1 = arith.constant 0 : index
    %c0_2 = arith.constant 0 : index
    %7 = vector.load %arg8[%c0_1, %c0_2] : memref<128x128xf32, #tpu.memory_space<vmem>>, vector<128x128xf32>
    %c0_3 = arith.constant 0 : index
    %c0_4 = arith.constant 0 : index
    %8 = vector.load %arg3[%c0_3, %c0_4] : memref<128x128xbf16, #tpu.memory_space<vmem>>, vector<128x128xbf16>
    %cst = arith.constant dense<0.000000e+00> : vector<128x128xf32>
    %9 = tpu.matmul %8, %6, %cst {dimension_numbers = #tpu.dot_dimension_numbers<[1], [0], [0], [1], [0, 0, 1, 1], [], []>} : vector<128x128xbf16>, vector<128x128xbf16>, vector<128x128xf32> -> vector<128x128xf32>
    %10 = arith.addf %7, %9 : vector<128x128xf32>
    %c0_5 = arith.constant 0 : index
    %c0_6 = arith.constant 0 : index
    %11 = vector.load %arg8[%c0_5, %c0_6] : memref<128x128xf32, #tpu.memory_space<vmem>>, vector<128x128xf32>
    tpu.vector_store %arg8[%c0_5, %c0_6], %10 {strides = array<i32>} : memref<128x128xf32, #tpu.memory_space<vmem>>, vector<128x128xf32>,
    %c0_i32_7 = arith.constant 0 : i32
    %12 = arith.cmpi eq, %arg2, %c0_i32_7 : i32
    %13 = arith.extui %12 : i1 to i32
    %c0_i32_8 = arith.constant 0 : i32
    %14 = arith.cmpi ne, %13, %c0_i32_8 : i32
    scf.if %14 {
      %c0_9 = arith.constant 0 : index
      %c0_10 = arith.constant 0 : index
      %15 = vector.load %arg5[%c0_9, %c0_10] : memref<8x128xf32, #tpu.memory_space<vmem>>, vector<1x128xf32>
      %c1 = arith.constant 1 : index
      %c0_11 = arith.constant 0 : index
      %16 = vector.load %arg5[%c1, %c0_11] : memref<8x128xf32, #tpu.memory_space<vmem>>, vector<1x128xf32>
      %c2 = arith.constant 2 : index
      %c0_12 = arith.constant 0 : index
      %17 = vector.load %arg5[%c2, %c0_12] : memref<8x128xf32, #tpu.memory_space<vmem>>, vector<1x128xf32>
      %c3 = arith.constant 3 : index
      %c0_13 = arith.constant 0 : index
      %18 = vector.load %arg5[%c3, %c0_13] : memref<8x128xf32, #tpu.memory_space<vmem>>, vector<1x128xf32>
      %c4 = arith.constant 4 : index
      %c0_14 = arith.constant 0 : index
      %19 = vector.load %arg5[%c4, %c0_14] : memref<8x128xf32, #tpu.memory_space<vmem>>, vector<1x128xf32>
      %c0_15 = arith.constant 0 : index
      %c0_16 = arith.constant 0 : index
      %20 = vector.load %arg8[%c0_15, %c0_16] : memref<128x128xf32, #tpu.memory_space<vmem>>, vector<128x128xf32>
      %21 = vector.broadcast %15 : vector<1x128xf32> to vector<128x128xf32>
      %22 = arith.mulf %20, %21 : vector<128x128xf32>
      %23 = vector.broadcast %16 : vector<1x128xf32> to vector<128x128xf32>
      %24 = arith.addf %22, %23 : vector<128x128xf32>
      %c0_17 = arith.constant 0 : index
      %c0_18 = arith.constant 0 : index
      %25 = vector.load %arg6[%c0_17, %c0_18] : memref<128x128xf32, #tpu.memory_space<vmem>>, vector<128x128xf32>
      %26 = arith.addf %24, %25 : vector<128x128xf32>
      %27 = vector.broadcast %17 : vector<1x128xf32> to vector<128x128xf32>
      %28 = arith.subf %26, %27 : vector<128x128xf32>
      %cst_19 = arith.constant 0.000000e+00 : f32
      %29 = vector.broadcast %cst_19 : f32 to vector<128x128xf32>
      %30 = arith.cmpf ogt, %28, %29 : vector<128x128xf32>
      %31 = vector.broadcast %18 : vector<1x128xf32> to vector<128x128xf32>
      %32 = arith.mulf %31, %28 : vector<128x128xf32>
      %33 = arith.select %30, %28, %32 : vector<128x128xi1>, vector<128x128xf32>
      %34 = vector.broadcast %19 : vector<1x128xf32> to vector<128x128xf32>
      %35 = arith.addf %33, %34 : vector<128x128xf32>
      %c0_20 = arith.constant 0 : index
      %c0_21 = arith.constant 0 : index
      %36 = vector.load %arg7[%c0_20, %c0_21] : memref<128x128xf32, #tpu.memory_space<vmem>>, vector<128x128xf32>
      tpu.vector_store %arg7[%c0_20, %c0_21], %35 {strides = array<i32>} : memref<128x128xf32, #tpu.memory_space<vmem>>, vector<128x128xf32>,
    } else {
    }
    return
  }
  func.func @transform_0(%arg0: i32, %arg1: i32, %arg2: i32) -> (i32, i32) {
    %c0_i32 = arith.constant 0 : i32
    return %arg0, %arg2 : i32, i32
  }
  func.func @transform_1(%arg0: i32, %arg1: i32, %arg2: i32) -> (i32, i32) {
    %c0_i32 = arith.constant 0 : i32
    %c0_i32_0 = arith.constant 0 : i32
    return %c0_i32, %arg1 : i32, i32
  }
  func.func @transform_2(%arg0: i32, %arg1: i32, %arg2: i32) -> (i32, i32) {
    %c0_i32 = arith.constant 0 : i32
    %c0_i32_0 = arith.constant 0 : i32
    return %c0_i32, %arg1 : i32, i32
  }
  func.func @transform_3(%arg0: i32, %arg1: i32, %arg2: i32) -> (i32, i32) {
    %c0_i32 = arith.constant 0 : i32
    return %arg0, %arg1 : i32, i32
  }
  func.func @transform_4(%arg0: i32, %arg1: i32, %arg2: i32) -> (i32, i32) {
    %c0_i32 = arith.constant 0 : i32
    return %arg0, %arg1 : i32, i32
  }
}

module attributes {stable_mosaic.version = 11 : i64} {
  func.func @_fused_bconv_kernel(%arg0: i32, %arg1: i32, %arg2: i32, %arg3: memref<128x256xbf16, #tpu.memory_space<vmem>>, %arg4: memref<256x128xbf16, #tpu.memory_space<vmem>>, %arg5: memref<8x128xf32, #tpu.memory_space<vmem>>, %arg6: memref<128x128xf32, #tpu.memory_space<vmem>>, %arg7: memref<128x128xf32, #tpu.memory_space<vmem>>, %arg8: memref<128x128xf32, #tpu.memory_space<vmem>>) attributes {dimension_semantics = [#tpu.dimension_semantics<parallel>, #tpu.dimension_semantics<parallel>, #tpu.dimension_semantics<arbitrary>], iteration_bounds = array<i64: 1, 1, 1>, scalar_prefetch = 0 : i64, scratch_operands = 1 : i64, tpu.core_type = #tpu.core_type<tc>, window_params = [{transform_indices = @transform_0, window_bounds = array<i64: 128, 256>}, {transform_indices = @transform_1, window_bounds = array<i64: 256, 128>}, {transform_indices = @transform_2, window_bounds = array<i64: 8, 128>}, {transform_indices = @transform_3, window_bounds = array<i64: 128, 128>}, {transform_indices = @transform_4, window_bounds = array<i64: 128, 128>}]} {
    %c0_i32 = arith.constant 0 : i32
    %0 = arith.cmpi eq, %arg2, %c0_i32 : i32
    %1 = arith.extui %0 : i1 to i32
    %c0_i32_0 = arith.constant 0 : i32
    %2 = arith.cmpi ne, %1, %c0_i32_0 : i32
    scf.if %2 {
      %cst_9 = arith.constant 0.000000e+00 : f32
      %15 = vector.broadcast %cst_9 : f32 to vector<128x128xf32>
      %c0_10 = arith.constant 0 : index
      %c0_11 = arith.constant 0 : index
      %16 = vector.load %arg8[%c0_10, %c0_11] : memref<128x128xf32, #tpu.memory_space<vmem>>, vector<128x128xf32>
      tpu.vector_store %arg8[%c0_10, %c0_11], %15 {strides = array<i32>} : memref<128x128xf32, #tpu.memory_space<vmem>>, vector<128x128xf32>,
    } else {
    }
    %c256_i32 = arith.constant 256 : i32
    %3 = arith.muli %arg2, %c256_i32 : i32
    %4 = tpu.assume_multiple %3, 256 : i32
    %5 = arith.index_cast %4 : i32 to index
    %c0 = arith.constant 0 : index
    %6 = vector.load %arg4[%5, %c0] : memref<256x128xbf16, #tpu.memory_space<vmem>>, vector<256x128xbf16>
    %c0_1 = arith.constant 0 : index
    %c0_2 = arith.constant 0 : index
    %7 = vector.load %arg8[%c0_1, %c0_2] : memref<128x128xf32, #tpu.memory_space<vmem>>, vector<128x128xf32>
    %c0_3 = arith.constant 0 : index
    %c0_4 = arith.constant 0 : index
    %8 = vector.load %arg3[%c0_3, %c0_4] : memref<128x256xbf16, #tpu.memory_space<vmem>>, vector<128x256xbf16>
    %cst = arith.constant dense<0.000000e+00> : vector<128x128xf32>
    %9 = tpu.matmul %8, %6, %cst {dimension_numbers = #tpu.dot_dimension_numbers<[1], [0], [0], [1], [0, 0, 1, 1], [], []>} : vector<128x256xbf16>, vector<256x128xbf16>, vector<128x128xf32> -> vector<128x128xf32>
    %10 = arith.addf %7, %9 : vector<128x128xf32>
    %c0_5 = arith.constant 0 : index
    %c0_6 = arith.constant 0 : index
    %11 = vector.load %arg8[%c0_5, %c0_6] : memref<128x128xf32, #tpu.memory_space<vmem>>, vector<128x128xf32>
    tpu.vector_store %arg8[%c0_5, %c0_6], %10 {strides = array<i32>} : memref<128x128xf32, #tpu.memory_space<vmem>>, vector<128x128xf32>,
    %c0_i32_7 = arith.constant 0 : i32
    %12 = arith.cmpi eq, %arg2, %c0_i32_7 : i32
    %13 = arith.extui %12 : i1 to i32
    %c0_i32_8 = arith.constant 0 : i32
    %14 = arith.cmpi ne, %13, %c0_i32_8 : i32
    scf.if %14 {
      %c0_9 = arith.constant 0 : index
      %c0_10 = arith.constant 0 : index
      %15 = vector.load %arg5[%c0_9, %c0_10] : memref<8x128xf32, #tpu.memory_space<vmem>>, vector<1x128xf32>
      %c1 = arith.constant 1 : index
      %c0_11 = arith.constant 0 : index
      %16 = vector.load %arg5[%c1, %c0_11] : memref<8x128xf32, #tpu.memory_space<vmem>>, vector<1x128xf32>
      %c2 = arith.constant 2 : index
      %c0_12 = arith.constant 0 : index
      %17 = vector.load %arg5[%c2, %c0_12] : memref<8x128xf32, #tpu.memory_space<vmem>>, vector<1x128xf32>
      %c3 = arith.constant 3 : index
      %c0_13 = arith.constant 0 : index
      %18 = vector.load %arg5[%c3, %c0_13] : memref<8x128xf32, #tpu.memory_space<vmem>>, vector<1x128xf32>
      %c4 = arith.constant 4 : index
      %c0_14 = arith.constant 0 : index
      %19 = vector.load %arg5[%c4, %c0_14] : memref<8x128xf32, #tpu.memory_space<vmem>>, vector<1x128xf32>
      %c0_15 = arith.constant 0 : index
      %c0_16 = arith.constant 0 : index
      %20 = vector.load %arg8[%c0_15, %c0_16] : memref<128x128xf32, #tpu.memory_space<vmem>>, vector<128x128xf32>
      %21 = vector.broadcast %15 : vector<1x128xf32> to vector<128x128xf32>
      %22 = arith.mulf %20, %21 : vector<128x128xf32>
      %23 = vector.broadcast %16 : vector<1x128xf32> to vector<128x128xf32>
      %24 = arith.addf %22, %23 : vector<128x128xf32>
      %c0_17 = arith.constant 0 : index
      %c0_18 = arith.constant 0 : index
      %25 = vector.load %arg6[%c0_17, %c0_18] : memref<128x128xf32, #tpu.memory_space<vmem>>, vector<128x128xf32>
      %26 = arith.addf %24, %25 : vector<128x128xf32>
      %27 = vector.broadcast %17 : vector<1x128xf32> to vector<128x128xf32>
      %28 = arith.subf %26, %27 : vector<128x128xf32>
      %cst_19 = arith.constant 0.000000e+00 : f32
      %29 = vector.broadcast %cst_19 : f32 to vector<128x128xf32>
      %30 = arith.cmpf ogt, %28, %29 : vector<128x128xf32>
      %31 = vector.broadcast %18 : vector<1x128xf32> to vector<128x128xf32>
      %32 = arith.mulf %31, %28 : vector<128x128xf32>
      %33 = arith.select %30, %28, %32 : vector<128x128xi1>, vector<128x128xf32>
      %34 = vector.broadcast %19 : vector<1x128xf32> to vector<128x128xf32>
      %35 = arith.addf %33, %34 : vector<128x128xf32>
      %c0_20 = arith.constant 0 : index
      %c0_21 = arith.constant 0 : index
      %36 = vector.load %arg7[%c0_20, %c0_21] : memref<128x128xf32, #tpu.memory_space<vmem>>, vector<128x128xf32>
      tpu.vector_store %arg7[%c0_20, %c0_21], %35 {strides = array<i32>} : memref<128x128xf32, #tpu.memory_space<vmem>>, vector<128x128xf32>,
    } else {
    }
    return
  }
  func.func @transform_0(%arg0: i32, %arg1: i32, %arg2: i32) -> (i32, i32) {
    %c0_i32 = arith.constant 0 : i32
    return %arg0, %arg2 : i32, i32
  }
  func.func @transform_1(%arg0: i32, %arg1: i32, %arg2: i32) -> (i32, i32) {
    %c0_i32 = arith.constant 0 : i32
    %c0_i32_0 = arith.constant 0 : i32
    return %c0_i32, %arg1 : i32, i32
  }
  func.func @transform_2(%arg0: i32, %arg1: i32, %arg2: i32) -> (i32, i32) {
    %c0_i32 = arith.constant 0 : i32
    %c0_i32_0 = arith.constant 0 : i32
    return %c0_i32, %arg1 : i32, i32
  }
  func.func @transform_3(%arg0: i32, %arg1: i32, %arg2: i32) -> (i32, i32) {
    %c0_i32 = arith.constant 0 : i32
    return %arg0, %arg1 : i32, i32
  }
  func.func @transform_4(%arg0: i32, %arg1: i32, %arg2: i32) -> (i32, i32) {
    %c0_i32 = arith.constant 0 : i32
    return %arg0, %arg1 : i32, i32
  }
}

module attributes {stable_mosaic.version = 11 : i64} {
  func.func @_fused_bconv_kernel(%arg0: i32, %arg1: i32, %arg2: i32, %arg3: memref<128x384xbf16, #tpu.memory_space<vmem>>, %arg4: memref<384x128xbf16, #tpu.memory_space<vmem>>, %arg5: memref<8x128xf32, #tpu.memory_space<vmem>>, %arg6: memref<128x128xf32, #tpu.memory_space<vmem>>, %arg7: memref<128x128xf32, #tpu.memory_space<vmem>>, %arg8: memref<128x128xf32, #tpu.memory_space<vmem>>) attributes {dimension_semantics = [#tpu.dimension_semantics<parallel>, #tpu.dimension_semantics<parallel>, #tpu.dimension_semantics<arbitrary>], iteration_bounds = array<i64: 1, 1, 1>, scalar_prefetch = 0 : i64, scratch_operands = 1 : i64, tpu.core_type = #tpu.core_type<tc>, window_params = [{transform_indices = @transform_0, window_bounds = array<i64: 128, 384>}, {transform_indices = @transform_1, window_bounds = array<i64: 384, 128>}, {transform_indices = @transform_2, window_bounds = array<i64: 8, 128>}, {transform_indices = @transform_3, window_bounds = array<i64: 128, 128>}, {transform_indices = @transform_4, window_bounds = array<i64: 128, 128>}]} {
    %c0_i32 = arith.constant 0 : i32
    %0 = arith.cmpi eq, %arg2, %c0_i32 : i32
    %1 = arith.extui %0 : i1 to i32
    %c0_i32_0 = arith.constant 0 : i32
    %2 = arith.cmpi ne, %1, %c0_i32_0 : i32
    scf.if %2 {
      %cst_9 = arith.constant 0.000000e+00 : f32
      %15 = vector.broadcast %cst_9 : f32 to vector<128x128xf32>
      %c0_10 = arith.constant 0 : index
      %c0_11 = arith.constant 0 : index
      %16 = vector.load %arg8[%c0_10, %c0_11] : memref<128x128xf32, #tpu.memory_space<vmem>>, vector<128x128xf32>
      tpu.vector_store %arg8[%c0_10, %c0_11], %15 {strides = array<i32>} : memref<128x128xf32, #tpu.memory_space<vmem>>, vector<128x128xf32>,
    } else {
    }
    %c384_i32 = arith.constant 384 : i32
    %3 = arith.muli %arg2, %c384_i32 : i32
    %4 = tpu.assume_multiple %3, 384 : i32
    %5 = arith.index_cast %4 : i32 to index
    %c0 = arith.constant 0 : index
    %6 = vector.load %arg4[%5, %c0] : memref<384x128xbf16, #tpu.memory_space<vmem>>, vector<384x128xbf16>
    %c0_1 = arith.constant 0 : index
    %c0_2 = arith.constant 0 : index
    %7 = vector.load %arg8[%c0_1, %c0_2] : memref<128x128xf32, #tpu.memory_space<vmem>>, vector<128x128xf32>
    %c0_3 = arith.constant 0 : index
    %c0_4 = arith.constant 0 : index
    %8 = vector.load %arg3[%c0_3, %c0_4] : memref<128x384xbf16, #tpu.memory_space<vmem>>, vector<128x384xbf16>
    %cst = arith.constant dense<0.000000e+00> : vector<128x128xf32>
    %9 = tpu.matmul %8, %6, %cst {dimension_numbers = #tpu.dot_dimension_numbers<[1], [0], [0], [1], [0, 0, 1, 1], [], []>} : vector<128x384xbf16>, vector<384x128xbf16>, vector<128x128xf32> -> vector<128x128xf32>
    %10 = arith.addf %7, %9 : vector<128x128xf32>
    %c0_5 = arith.constant 0 : index
    %c0_6 = arith.constant 0 : index
    %11 = vector.load %arg8[%c0_5, %c0_6] : memref<128x128xf32, #tpu.memory_space<vmem>>, vector<128x128xf32>
    tpu.vector_store %arg8[%c0_5, %c0_6], %10 {strides = array<i32>} : memref<128x128xf32, #tpu.memory_space<vmem>>, vector<128x128xf32>,
    %c0_i32_7 = arith.constant 0 : i32
    %12 = arith.cmpi eq, %arg2, %c0_i32_7 : i32
    %13 = arith.extui %12 : i1 to i32
    %c0_i32_8 = arith.constant 0 : i32
    %14 = arith.cmpi ne, %13, %c0_i32_8 : i32
    scf.if %14 {
      %c0_9 = arith.constant 0 : index
      %c0_10 = arith.constant 0 : index
      %15 = vector.load %arg5[%c0_9, %c0_10] : memref<8x128xf32, #tpu.memory_space<vmem>>, vector<1x128xf32>
      %c1 = arith.constant 1 : index
      %c0_11 = arith.constant 0 : index
      %16 = vector.load %arg5[%c1, %c0_11] : memref<8x128xf32, #tpu.memory_space<vmem>>, vector<1x128xf32>
      %c2 = arith.constant 2 : index
      %c0_12 = arith.constant 0 : index
      %17 = vector.load %arg5[%c2, %c0_12] : memref<8x128xf32, #tpu.memory_space<vmem>>, vector<1x128xf32>
      %c3 = arith.constant 3 : index
      %c0_13 = arith.constant 0 : index
      %18 = vector.load %arg5[%c3, %c0_13] : memref<8x128xf32, #tpu.memory_space<vmem>>, vector<1x128xf32>
      %c4 = arith.constant 4 : index
      %c0_14 = arith.constant 0 : index
      %19 = vector.load %arg5[%c4, %c0_14] : memref<8x128xf32, #tpu.memory_space<vmem>>, vector<1x128xf32>
      %c0_15 = arith.constant 0 : index
      %c0_16 = arith.constant 0 : index
      %20 = vector.load %arg8[%c0_15, %c0_16] : memref<128x128xf32, #tpu.memory_space<vmem>>, vector<128x128xf32>
      %21 = vector.broadcast %15 : vector<1x128xf32> to vector<128x128xf32>
      %22 = arith.mulf %20, %21 : vector<128x128xf32>
      %23 = vector.broadcast %16 : vector<1x128xf32> to vector<128x128xf32>
      %24 = arith.addf %22, %23 : vector<128x128xf32>
      %c0_17 = arith.constant 0 : index
      %c0_18 = arith.constant 0 : index
      %25 = vector.load %arg6[%c0_17, %c0_18] : memref<128x128xf32, #tpu.memory_space<vmem>>, vector<128x128xf32>
      %26 = arith.addf %24, %25 : vector<128x128xf32>
      %27 = vector.broadcast %17 : vector<1x128xf32> to vector<128x128xf32>
      %28 = arith.subf %26, %27 : vector<128x128xf32>
      %cst_19 = arith.constant 0.000000e+00 : f32
      %29 = vector.broadcast %cst_19 : f32 to vector<128x128xf32>
      %30 = arith.cmpf ogt, %28, %29 : vector<128x128xf32>
      %31 = vector.broadcast %18 : vector<1x128xf32> to vector<128x128xf32>
      %32 = arith.mulf %31, %28 : vector<128x128xf32>
      %33 = arith.select %30, %28, %32 : vector<128x128xi1>, vector<128x128xf32>
      %34 = vector.broadcast %19 : vector<1x128xf32> to vector<128x128xf32>
      %35 = arith.addf %33, %34 : vector<128x128xf32>
      %c0_20 = arith.constant 0 : index
      %c0_21 = arith.constant 0 : index
      %36 = vector.load %arg7[%c0_20, %c0_21] : memref<128x128xf32, #tpu.memory_space<vmem>>, vector<128x128xf32>
      tpu.vector_store %arg7[%c0_20, %c0_21], %35 {strides = array<i32>} : memref<128x128xf32, #tpu.memory_space<vmem>>, vector<128x128xf32>,
    } else {
    }
    return
  }
  func.func @transform_0(%arg0: i32, %arg1: i32, %arg2: i32) -> (i32, i32) {
    %c0_i32 = arith.constant 0 : i32
    return %arg0, %arg2 : i32, i32
  }
  func.func @transform_1(%arg0: i32, %arg1: i32, %arg2: i32) -> (i32, i32) {
    %c0_i32 = arith.constant 0 : i32
    %c0_i32_0 = arith.constant 0 : i32
    return %c0_i32, %arg1 : i32, i32
  }
  func.func @transform_2(%arg0: i32, %arg1: i32, %arg2: i32) -> (i32, i32) {
    %c0_i32 = arith.constant 0 : i32
    %c0_i32_0 = arith.constant 0 : i32
    return %c0_i32, %arg1 : i32, i32
  }
  func.func @transform_3(%arg0: i32, %arg1: i32, %arg2: i32) -> (i32, i32) {
    %c0_i32 = arith.constant 0 : i32
    return %arg0, %arg1 : i32, i32
  }
  func.func @transform_4(%arg0: i32, %arg1: i32, %arg2: i32) -> (i32, i32) {
    %c0_i32 = arith.constant 0 : i32
    return %arg0, %arg1 : i32, i32
  }
}

</mosaic_0001>

<bundles_post_ra>
// kernel: _forward_impl.6
= control target key start
LH: loop header
LB: loop body
LE: loop exit
PB: predicated region body
PF: predicated region fallthrough
CT: control target
= control target key end

     0   :  { %s901_s1 = inlined_call_operand.vmem [shape: bf16[128,128], index: 1, kind: input, shape index: {}]   ;;  %s902_s0 = inlined_call_operand.vmem [shape: bf16[128,128], index: 0, kind: input, shape index: {}]   ;;  %s903_s2 = inlined_call_operand.vmem [shape: f32[8,128], index: 2, kind: input, shape index: {}]   ;;  %s904_s3 = inlined_call_operand.vmem [shape: f32[128,128], index: 3, kind: input, shape index: {}]   ;;  %s905_s4 = inlined_call_operand.vmem [shape: f32[128,128], index: 4, kind: output, shape index: {}]  }
   0x1   :  { %v611_v0 = vld [vmem:[%s901_s1 + $0x38] sm:$0xff]   ;;  %v612_v1 = vld [vmem:[%s901_s1 + $0x30] sm:$0xff]   ;;  %v613_v2 = vld [vmem:[%s901_s1 + $0x28] sm:$0xff]  }
   0x2   :  { %563 = vmatprep.subr.bf16.mxu0 %v611_v0  ;;  %595 = vmatprep.subr.bf16.mxu1 %v611_v0  ;;  %v614_v3 = vld [vmem:[%s901_s1 + $0x20] sm:$0xff]   ;;  %v615_v6 = vld [vmem:[%s901_s1 + $0x18] sm:$0xff]   ;;  %v616_v7 = vld [vmem:[%s901_s1 + $0x10] sm:$0xff]  }
   0x3   :  { %564 = vmatpush3.bf16.msra.mxu0 %v611_v0  ;;  %603 = vmatpush3.bf16.msra.mxu1 %v611_v0  ;;  %v619_v4 = vld [vmem:[%s902_s0] sm:$0xff]   ;;  %v617_v8 = vld [vmem:[%s901_s1 + $0x8] sm:$0xff]   ;;  %v623_v12 = vld [vmem:[%s902_s0 + $0x10] sm:$0xff]  }
   0x4   :  { %565 = vmatprep.subr.bf16.mxu0 %v612_v1  ;;  %596 = vmatprep.subr.bf16.mxu1 %v612_v1  ;;  %v620_v5 = vld [vmem:[%s902_s0 + $0x20] sm:$0xff]   ;;  %v621_v10 = vld [vmem:[%s902_s0 + $0x8] sm:$0xff]   ;;  %v624_v13 = vld [vmem:[%s902_s0 + $0x30] sm:$0xff]  }
   0x5   :  { %579 = vmatprep.mubr.bf16.mxu0 %v619_v4  ;;  %587 = vmatprep.mubr.bf16.mxu1 %v620_v5  ;;  %v618_v9 = vld [vmem:[%s901_s1] sm:$0xff]   ;;  %v622_v11 = vld [vmem:[%s902_s0 + $0x28] sm:$0xff]   ;;  %v625_v14 = vld [vmem:[%s902_s0 + $0x18] sm:$0xff]  }
   0x6   :  { %v626_v15 = vld [vmem:[%s902_s0 + $0x38] sm:$0xff]   ;;  %v703_v16 = vld [vmem:[%s903_s2] ss:$0 sm:$0xff]  ;;  %v708_v18 = vld [vmem:[%s903_s2 + $0x1] ss:$0 sm:$0xff] }
   0x7   :  { %566 = vmatpush3.bf16.msra.mxu0 %v612_v1  ;;  %604 = vmatpush3.bf16.msra.mxu1 %v612_v1  ;;  %v382_v22 = vld [vmem:[%s904_s3 + $0x10] sm:$0xff]  ;;  %v725_v30 = vld [vmem:[%s903_s2 + $0x2] ss:$0 sm:$0xff]  ;;  %v738_v39 = vld [vmem:[%s903_s2 + $0x3] ss:$0 sm:$0xff] }
   0x8   :  { %567 = vmatprep.subr.bf16.mxu0 %v613_v2  ;;  %597 = vmatprep.subr.bf16.mxu1 %v613_v2  ;;  %v390_v23 = vld [vmem:[%s904_s3 + $0x50] sm:$0xff]  ;;  %v380_v31 = vld [vmem:[%s904_s3] sm:$0xff]  ;;  %v383_v48 = vld [vmem:[%s904_s3 + $0x18] sm:$0xff] }
   0x9   :  { %v388_v32 = vld [vmem:[%s904_s3 + $0x40] sm:$0xff]  ;;  %v391_v49 = vld [vmem:[%s904_s3 + $0x58] sm:$0xff]  ;;  %v389_v4 = vld [vmem:[%s904_s3 + $0x48] sm:$0xff] }
   0xa   :  { %v757_v54 = vld [vmem:[%s903_s2 + $0x4] ss:$0 sm:$0xff] }
   0xb   :  { %568 = vmatpush3.bf16.msra.mxu0 %v613_v2  ;;  %605 = vmatpush3.bf16.msra.mxu1 %v613_v2  ;;  %v381_v2 = vld [vmem:[%s904_s3 + $0x8] sm:$0xff] }
   0xc   :  { %569 = vmatprep.subr.bf16.mxu0 %v614_v3  ;;  %598 = vmatprep.subr.bf16.mxu1 %v614_v3 }
   0xf   :  { %570 = vmatpush3.bf16.msra.mxu0 %v614_v3  ;;  %606 = vmatpush3.bf16.msra.mxu1 %v614_v3 }
  0x10   :  { %571 = vmatprep.subr.bf16.mxu0 %v615_v6  ;;  %599 = vmatprep.subr.bf16.mxu1 %v615_v6 }
  0x13   :  { %572 = vmatpush3.bf16.msra.mxu0 %v615_v6  ;;  %607 = vmatpush3.bf16.msra.mxu1 %v615_v6 }
  0x14   :  { %573 = vmatprep.subr.bf16.mxu0 %v616_v7  ;;  %600 = vmatprep.subr.bf16.mxu1 %v616_v7 }
  0x17   :  { %574 = vmatpush3.bf16.msra.mxu0 %v616_v7  ;;  %608 = vmatpush3.bf16.msra.mxu1 %v616_v7 }
  0x18   :  { %575 = vmatprep.subr.bf16.mxu0 %v617_v8  ;;  %601 = vmatprep.subr.bf16.mxu1 %v617_v8 }
  0x1b   :  { %576 = vmatpush3.bf16.msra.mxu0 %v617_v8  ;;  %609 = vmatpush3.bf16.msra.mxu1 %v617_v8 }
  0x1c   :  { %577 = vmatprep.subr.bf16.mxu0 %v618_v9  ;;  %602 = vmatprep.subr.bf16.mxu1 %v618_v9 }
  0x1f   :  { %578 = vmatpush3.bf16.msra.mxu0 %v618_v9  ;;  %610 = vmatpush3.bf16.msra.mxu1 %v618_v9 }
  0x22   :  { %580 = vmatmul.mubr.bf16.vlgmr.msra.gmra.mxu0 %v621_v10  ;;  %588 = vmatmul.mubr.bf16.vlgmr.msra.gmra.mxu1 %v622_v11 }
  0x23   :  { %583 = vmatprep.mubr.bf16.mxu0 %v623_v12  ;;  %591 = vmatprep.mubr.bf16.mxu1 %v624_v13 }
  0x2a   :  { %584 = vmatmul.mubr.bf16.gmra.mxu0 %v625_v14  ;;  %592 = vmatmul.mubr.bf16.gmra.mxu1 %v626_v15 }
  0xe2   :  { %v581_v17 = vpop.f32.mrf.mxu0  ;;  %v589_v19 = vpop.f32.mrf.mxu1 }
  0xe3   :  { %v346_v20 = vmul.f32 %v581_v17, %v703_v16  ;;  %v354_v21 = vmul.f32 %v589_v19, %v703_v16 }
  0xe4   :  { %v221_v24 = vpop.f32.mrf.mxu0  ;;  %v253_v25 = vpop.f32.mrf.mxu1 }
  0xe5   :  { %v366_v26 = vadd.f32 %v708_v18, %v346_v20  ;;  %v374_v27 = vadd.f32 %v708_v18, %v354_v21  ;;  %v344_v28 = vmul.f32 %v703_v16, %v221_v24  ;;  %v352_v29 = vmul.f32 %v703_v16, %v253_v25  ;;  %v386_v25 = vld [vmem:[%s904_s3 + $0x30] sm:$0xff] }
  0xe6   :  { %v582_v33 = vpop.f32.mrf.mxu0  ;;  %v590_v34 = vpop.f32.mrf.mxu1 }
  0xe7   :  { %v398_v35 = vadd.f32 %v382_v22, %v366_v26  ;;  %v406_v36 = vadd.f32 %v390_v23, %v374_v27  ;;  %v364_v37 = vadd.f32 %v708_v18, %v344_v28  ;;  %v372_v38 = vadd.f32 %v708_v18, %v352_v29 }
  0xe8   :  { %v347_v40 = vmul.f32 %v582_v33, %v703_v16  ;;  %v355_v41 = vmul.f32 %v590_v34, %v703_v16  ;;  %v224_v42 = vpop.f32.mrf.mxu0  ;;  %v256_v43 = vpop.f32.mrf.mxu1 }
  0xe9   :  { %v418_v44 = vsub.f32 %v398_v35, %v725_v30  ;;  %v426_v45 = vsub.f32 %v406_v36, %v725_v30  ;;  %v396_v46 = vadd.f32 %v380_v31, %v364_v37  ;;  %v404_v47 = vadd.f32 %v388_v32, %v372_v38 }
  0xea   :  { %v367_v50 = vadd.f32 %v708_v18, %v347_v40  ;;  %v375_v51 = vadd.f32 %v708_v18, %v355_v41  ;;  %v345_v52 = vmul.f32 %v703_v16, %v224_v42  ;;  %v353_v53 = vmul.f32 %v703_v16, %v256_v43  ;;  %v585_v57 = vpop.f32.mrf.mxu0  ;;  %v593_v62 = vpop.f32.mrf.mxu1  ;;  %v394_v40 = vld [vmem:[%s904_s3 + $0x70] sm:$0xff] }
  0xeb   :  { %vm434_vm0 = vcmp.gt.f32.partialorder %v418_v44, 0.0  ;;  %v454_v55 = vmul.f32 %v738_v39, %v418_v44  ;;  %vm442_vm1 = vcmp.gt.f32.partialorder %v426_v45, 0.0  ;;  %v462_v56 = vmul.f32 %v738_v39, %v426_v45 }
  0xec   :  { %v416_v58 = vsub.f32 %v396_v46, %v725_v30  ;;  %v424_v59 = vsub.f32 %v404_v47, %v725_v30  ;;  %v399_v60 = vadd.f32 %v383_v48, %v367_v50  ;;  %v407_v61 = vadd.f32 %v391_v49, %v375_v51  ;;  %v237_v11 = vpop.f32.mrf.mxu0  ;;  %v269_v17 = vpop.f32.mrf.mxu1  ;;  %v384_v48 = vld [vmem:[%s904_s3 + $0x20] sm:$0xff] }
  0xed   :  { %v470_v63 = vsel %vm434_vm0, %v418_v44, %v454_v55  ;;  %v478_v0 = vsel %vm442_vm1, %v426_v45, %v462_v56  ;;  %v365_v1 = vadd.f32 %v708_v18, %v345_v52  ;;  %v373_v3 = vadd.f32 %v708_v18, %v353_v53  ;;  %v392_v49 = vld [vmem:[%s904_s3 + $0x60] sm:$0xff] }
  0xee   :  { %v490_v5 = vadd.f32 %v757_v54, %v470_v63  ;;  %v498_v6 = vadd.f32 %v757_v54, %v478_v0  ;;  %vm432_vm2 = vcmp.gt.f32.partialorder %v416_v58, 0.0  ;;  %v452_v7 = vmul.f32 %v738_v39, %v416_v58  ;;  %v586_v31 = vpop.f32.mrf.mxu0  ;;  %v594_v35 = vpop.f32.mrf.mxu1 }
  0xef   :  { %vm440_vm3 = vcmp.gt.f32.partialorder %v424_v59, 0.0  ;;  %v460_v8 = vmul.f32 %v738_v39, %v424_v59  ;;  %v419_v9 = vsub.f32 %v399_v60, %v725_v30  ;;  %v427_v10 = vsub.f32 %v407_v61, %v725_v30 }
  0xf0   :  { %506 = vst [vmem:[%s905_s4 + $0x10] sm:$0xff] %v490_v5  ;;  %514 = vst [vmem:[%s905_s4 + $0x50] sm:$0xff] %v498_v6  ;;  %v468_v12 = vsel %vm432_vm2, %v416_v58, %v452_v7  ;;  %v397_v13 = vadd.f32 %v381_v2, %v365_v1  ;;  %v405_v14 = vadd.f32 %v389_v4, %v373_v3  ;;  %v240_v51 = vpop.f32.mrf.mxu0  ;;  %v272_v58 = vpop.f32.mrf.mxu1  ;;  %v395_v1 = vld [vmem:[%s904_s3 + $0x78] sm:$0xff] }
  0xf1   :  { %v350_v15 = vmul.f32 %v585_v57, %v703_v16  ;;  %v488_v19 = vadd.f32 %v757_v54, %v468_v12  ;;  %v476_v20 = vsel %vm440_vm3, %v424_v59, %v460_v8  ;;  %vm435_vm4 = vcmp.gt.f32.partialorder %v419_v9, 0.0  ;;  %v387_v57 = vld [vmem:[%s904_s3 + $0x38] sm:$0xff] }
  0xf2   :  { %v455_v21 = vmul.f32 %v738_v39, %v419_v9  ;;  %v496_v22 = vadd.f32 %v757_v54, %v476_v20  ;;  %vm443_vm5 = vcmp.gt.f32.partialorder %v427_v10, 0.0  ;;  %v463_v23 = vmul.f32 %v738_v39, %v427_v10 }
  0xf3   :  { %v417_v24 = vsub.f32 %v397_v13, %v725_v30  ;;  %504 = vst [vmem:[%s905_s4] sm:$0xff] %v488_v19  ;;  %v425_v27 = vsub.f32 %v405_v14, %v725_v30  ;;  %v370_v28 = vadd.f32 %v708_v18, %v350_v15  ;;  %v358_v29 = vmul.f32 %v593_v62, %v703_v16  ;;  %v385_v14 = vld [vmem:[%s904_s3 + $0x28] sm:$0xff] }
  0xf4   :  { %v471_v26 = vsel %vm435_vm4, %v419_v9, %v455_v21  ;;  %512 = vst [vmem:[%s905_s4 + $0x40] sm:$0xff] %v496_v22  ;;  %v479_v33 = vsel %vm443_vm5, %v427_v10, %v463_v23  ;;  %v348_v43 = vmul.f32 %v703_v16, %v237_v11  ;;  %v356_v44 = vmul.f32 %v703_v16, %v269_v17  ;;  %v393_v19 = vld [vmem:[%s904_s3 + $0x68] sm:$0xff] }
  0xf5   :  { %v491_v32 = vadd.f32 %v757_v54, %v471_v26  ;;  %vm433_vm6 = vcmp.gt.f32.partialorder %v417_v24, 0.0  ;;  %v453_v34 = vmul.f32 %v738_v39, %v417_v24  ;;  %v499_v36 = vadd.f32 %v757_v54, %v479_v33 }
  0xf6   :  { %vm441_vm7 = vcmp.gt.f32.partialorder %v425_v27, 0.0  ;;  %v461_v37 = vmul.f32 %v738_v39, %v425_v27  ;;  %v402_v38 = vadd.f32 %v386_v25, %v370_v28  ;;  %v378_v42 = vadd.f32 %v708_v18, %v358_v29 }
  0xf7   :  { %507 = vst [vmem:[%s905_s4 + $0x18] sm:$0xff] %v491_v32  ;;  %v469_v41 = vsel %vm433_vm6, %v417_v24, %v453_v34  ;;  %515 = vst [vmem:[%s905_s4 + $0x58] sm:$0xff] %v499_v36  ;;  %v351_v50 = vmul.f32 %v586_v31, %v703_v16  ;;  %v368_v55 = vadd.f32 %v708_v18, %v348_v43 }
  0xf8   :  { %v489_v45 = vadd.f32 %v757_v54, %v469_v41  ;;  %v477_v46 = vsel %vm441_vm7, %v425_v27, %v461_v37  ;;  %v422_v47 = vsub.f32 %v402_v38, %v725_v30  ;;  %v410_v53 = vadd.f32 %v394_v40, %v378_v42 }
  0xf9   :  { %v497_v52 = vadd.f32 %v757_v54, %v477_v46  ;;  %v376_v56 = vadd.f32 %v708_v18, %v356_v44  ;;  %v371_v60 = vadd.f32 %v708_v18, %v351_v50  ;;  %v359_v61 = vmul.f32 %v594_v35, %v703_v16 }
  0xfa   :  { %505 = vst [vmem:[%s905_s4 + $0x8] sm:$0xff] %v489_v45  ;;  %vm438_vm8 = vcmp.gt.f32.partialorder %v422_v47, 0.0  ;;  %v458_v59 = vmul.f32 %v738_v39, %v422_v47  ;;  %v430_v62 = vsub.f32 %v410_v53, %v725_v30  ;;  %v400_v63 = vadd.f32 %v384_v48, %v368_v55 }
  0xfb   :  { %513 = vst [vmem:[%s905_s4 + $0x48] sm:$0xff] %v497_v52  ;;  %v408_v0 = vadd.f32 %v392_v49, %v376_v56  ;;  %v349_v2 = vmul.f32 %v703_v16, %v240_v51  ;;  %v403_v4 = vadd.f32 %v387_v57, %v371_v60  ;;  %v379_v5 = vadd.f32 %v708_v18, %v359_v61 }
  0xfc   :  { %v474_v3 = vsel %vm438_vm8, %v422_v47, %v458_v59  ;;  %v357_v6 = vmul.f32 %v703_v16, %v272_v58  ;;  %vm446_vm9 = vcmp.gt.f32.partialorder %v430_v62, 0.0  ;;  %v466_v8 = vmul.f32 %v738_v39, %v430_v62 }
  0xfd   :  { %v494_v7 = vadd.f32 %v757_v54, %v474_v3  ;;  %v420_v9 = vsub.f32 %v400_v63, %v725_v30  ;;  %v428_v10 = vsub.f32 %v408_v0, %v725_v30  ;;  %v423_v11 = vsub.f32 %v403_v4, %v725_v30 }
  0xfe   :  { %v411_v12 = vadd.f32 %v395_v1, %v379_v5  ;;  %v369_v13 = vadd.f32 %v708_v18, %v349_v2  ;;  %v482_v16 = vsel %vm446_vm9, %v430_v62, %v466_v8  ;;  %v377_v17 = vadd.f32 %v708_v18, %v357_v6 }
  0xff   :  { %510 = vst [vmem:[%s905_s4 + $0x30] sm:$0xff] %v494_v7  ;;  %vm436_vm10 = vcmp.gt.f32.partialorder %v420_v9, 0.0  ;;  %v456_v15 = vmul.f32 %v738_v39, %v420_v9  ;;  %v502_v20 = vadd.f32 %v757_v54, %v482_v16  ;;  %vm444_vm11 = vcmp.gt.f32.partialorder %v428_v10, 0.0 }
 0x100   :  { %v464_v21 = vmul.f32 %v738_v39, %v428_v10  ;;  %vm439_vm12 = vcmp.gt.f32.partialorder %v423_v11, 0.0  ;;  %v459_v23 = vmul.f32 %v738_v39, %v423_v11  ;;  %v431_v24 = vsub.f32 %v411_v12, %v725_v30 }
 0x101   :  { %v472_v22 = vsel %vm436_vm10, %v420_v9, %v456_v15  ;;  %v401_v25 = vadd.f32 %v385_v14, %v369_v13  ;;  %518 = vst [vmem:[%s905_s4 + $0x70] sm:$0xff] %v502_v20  ;;  %v409_v27 = vadd.f32 %v393_v19, %v377_v17 }
 0x102   :  { %v492_v18 = vadd.f32 %v757_v54, %v472_v22  ;;  %v480_v26 = vsel %vm444_vm11, %v428_v10, %v464_v21  ;;  %v475_v29 = vsel %vm439_vm12, %v423_v11, %v459_v23  ;;  %vm447_vm13 = vcmp.gt.f32.partialorder %v431_v24, 0.0 }
 0x103   :  { %v500_v28 = vadd.f32 %v757_v54, %v480_v26  ;;  %v467_v31 = vmul.f32 %v738_v39, %v431_v24  ;;  %v495_v32 = vadd.f32 %v757_v54, %v475_v29  ;;  %v421_v33 = vsub.f32 %v401_v25, %v725_v30 }
 0x104   :  { %508 = vst [vmem:[%s905_s4 + $0x20] sm:$0xff] %v492_v18  ;;  %v429_v34 = vsub.f32 %v409_v27, %v725_v30 }
 0x105   :  { %516 = vst [vmem:[%s905_s4 + $0x60] sm:$0xff] %v500_v28  ;;  %v483_v35 = vsel %vm447_vm13, %v431_v24, %v467_v31  ;;  %511 = vst [vmem:[%s905_s4 + $0x38] sm:$0xff] %v495_v32  ;;  %vm437_vm14 = vcmp.gt.f32.partialorder %v421_v33, 0.0  ;;  %v457_v37 = vmul.f32 %v738_v39, %v421_v33 }
 0x106   :  { %v503_v36 = vadd.f32 %v757_v54, %v483_v35  ;;  %vm445_vm15 = vcmp.gt.f32.partialorder %v429_v34, 0.0  ;;  %v465_v38 = vmul.f32 %v738_v39, %v429_v34 }
 0x107   :  { %v473_v30 = vsel %vm437_vm14, %v421_v33, %v457_v37 }
 0x108   :  { %519 = vst [vmem:[%s905_s4 + $0x78] sm:$0xff] %v503_v36  ;;  %v493_v40 = vadd.f32 %v757_v54, %v473_v30  ;;  %v481_v41 = vsel %vm445_vm15, %v429_v34, %v465_v38 }
 0x109   :  { %v501_v42 = vadd.f32 %v757_v54, %v481_v41 }
 0x10a   :  { %509 = vst [vmem:[%s905_s4 + $0x28] sm:$0xff] %v493_v40 }
 0x10b   :  { %517 = vst [vmem:[%s905_s4 + $0x68] sm:$0xff] %v501_v42 }

// kernel: _forward_impl.9
= control target key start
LH: loop header
LB: loop body
LE: loop exit
PB: predicated region body
PF: predicated region fallthrough
CT: control target
= control target key end

     0   :  { %s1101_s1 = inlined_call_operand.vmem [shape: bf16[256,128], index: 1, kind: input, shape index: {}]   ;;  %s1102_s0 = inlined_call_operand.vmem [shape: bf16[128,256], index: 0, kind: input, shape index: {}]   ;;  %s1103_s2 = inlined_call_operand.vmem [shape: f32[8,128], index: 2, kind: input, shape index: {}]   ;;  %s1104_s3 = inlined_call_operand.vmem [shape: f32[128,128], index: 3, kind: input, shape index: {}]   ;;  %s1105_s4 = inlined_call_operand.vmem [shape: f32[128,128], index: 4, kind: output, shape index: {}]  }
   0x1   :  { %v739_v0 = vld [vmem:[%s1101_s1 + $0x78] sm:$0xff]   ;;  %v741_v2 = vld [vmem:[%s1101_s1 + $0x70] sm:$0xff]   ;;  %v743_v4 = vld [vmem:[%s1101_s1 + $0x68] sm:$0xff]  }
   0x2   :  { %v740_v1 = vld [vmem:[%s1101_s1 + $0x38] sm:$0xff]   ;;  %659 = vmatprep.subr.bf16.mxu0 %v739_v0  ;;  %723 = vmatprep.subr.bf16.mxu1 %v739_v0  ;;  %v742_v3 = vld [vmem:[%s1101_s1 + $0x30] sm:$0xff]   ;;  %v744_v5 = vld [vmem:[%s1101_s1 + $0x28] sm:$0xff]  }
   0x3   :  { %660 = vmatpush3.bf16.msra.mxu0 %v740_v1  ;;  %731 = vmatpush3.bf16.msra.mxu1 %v740_v1  ;;  %v745_v6 = vld [vmem:[%s1101_s1 + $0x60] sm:$0xff]   ;;  %v747_v8 = vld [vmem:[%s1101_s1 + $0x58] sm:$0xff]   ;;  %v749_v10 = vld [vmem:[%s1101_s1 + $0x50] sm:$0xff]  }
   0x4   :  { %661 = vmatprep.subr.bf16.mxu0 %v741_v2  ;;  %724 = vmatprep.subr.bf16.mxu1 %v741_v2  ;;  %v746_v7 = vld [vmem:[%s1101_s1 + $0x20] sm:$0xff]   ;;  %v748_v9 = vld [vmem:[%s1101_s1 + $0x18] sm:$0xff]   ;;  %v750_v13 = vld [vmem:[%s1101_s1 + $0x10] sm:$0xff]  }
   0x5   :  { %v757_v11 = vld [vmem:[%s1102_s0 + $0x4] ss:$8 sps:$4 sm:$0xff]   ;;  %v755_v18 = vld [vmem:[%s1102_s0] ss:$8 sps:$4 sm:$0xff]   ;;  %v761_v20 = vld [vmem:[%s1102_s0 + $0x14] ss:$8 sps:$4 sm:$0xff]  }
   0x6   :  { %v760_v12 = vld [vmem:[%s1102_s0 + $0x44] ss:$8 sps:$4 sm:$0xff]   ;;  %315 = vmatprep.mubr.bf16.mxu0 %v757_v11  ;;  %v758_v19 = vld [vmem:[%s1102_s0 + $0x40] ss:$8 sps:$4 sm:$0xff]   ;;  %v763_v21 = vld [vmem:[%s1102_s0 + $0x54] ss:$8 sps:$4 sm:$0xff]  }
   0x7   :  { %662 = vmatpush3.bf16.msra.mxu0 %v742_v3  ;;  %732 = vmatpush3.bf16.msra.mxu1 %v742_v3  ;;  %v751_v14 = vld [vmem:[%s1101_s1 + $0x48] sm:$0xff]   ;;  %v753_v16 = vld [vmem:[%s1101_s1 + $0x40] sm:$0xff]   ;;  %v765_v22 = vld [vmem:[%s1102_s0 + $0x10] ss:$8 sps:$4 sm:$0xff]  }
   0x8   :  { %663 = vmatprep.subr.bf16.mxu0 %v743_v4  ;;  %725 = vmatprep.subr.bf16.mxu1 %v743_v4  ;;  %v752_v15 = vld [vmem:[%s1101_s1 + $0x8] sm:$0xff]   ;;  %v754_v17 = vld [vmem:[%s1101_s1] sm:$0xff]   ;;  %v766_v23 = vld [vmem:[%s1102_s0 + $0x50] ss:$8 sps:$4 sm:$0xff]  }
   0x9   :  { %347 = vmatprep.mubr.bf16.mxu1 %v760_v12  ;;  %v767_v24 = vld [vmem:[%s1102_s0 + $0x24] ss:$8 sps:$4 sm:$0xff]   ;;  %v771_v26 = vld [vmem:[%s1102_s0 + $0x20] ss:$8 sps:$4 sm:$0xff]   ;;  %v773_v28 = vld [vmem:[%s1102_s0 + $0x34] ss:$8 sps:$4 sm:$0xff]  }
   0xa   :  { %v769_v25 = vld [vmem:[%s1102_s0 + $0x64] ss:$8 sps:$4 sm:$0xff]   ;;  %v772_v27 = vld [vmem:[%s1102_s0 + $0x60] ss:$8 sps:$4 sm:$0xff]   ;;  %v775_v29 = vld [vmem:[%s1102_s0 + $0x74] ss:$8 sps:$4 sm:$0xff]  }
   0xb   :  { %664 = vmatpush3.bf16.msra.mxu0 %v744_v5  ;;  %733 = vmatpush3.bf16.msra.mxu1 %v744_v5  ;;  %v777_v30 = vld [vmem:[%s1102_s0 + $0x30] ss:$8 sps:$4 sm:$0xff]   ;;  %v903_v35 = vld [vmem:[%s1103_s2] ss:$0 sm:$0xff]  ;;  %v908_v39 = vld [vmem:[%s1103_s2 + $0x1] ss:$0 sm:$0xff] }
   0xc   :  { %665 = vmatprep.subr.bf16.mxu0 %v745_v6  ;;  %726 = vmatprep.subr.bf16.mxu1 %v745_v6  ;;  %v778_v31 = vld [vmem:[%s1102_s0 + $0x70] ss:$8 sps:$4 sm:$0xff]   ;;  %v476_v44 = vld [vmem:[%s1104_s3] sm:$0xff]  ;;  %v477_v1 = vld [vmem:[%s1104_s3 + $0x8] sm:$0xff] }
   0xd   :  { %v484_v45 = vld [vmem:[%s1104_s3 + $0x40] sm:$0xff]  ;;  %v485_v3 = vld [vmem:[%s1104_s3 + $0x48] sm:$0xff] }
   0xe   :  { %v923_v52 = vld [vmem:[%s1103_s2 + $0x2] ss:$0 sm:$0xff]  ;;  %v930_v59 = vld [vmem:[%s1103_s2 + $0x3] ss:$0 sm:$0xff] }
   0xf   :  { %666 = vmatpush3.bf16.msra.mxu0 %v746_v7  ;;  %734 = vmatpush3.bf16.msra.mxu1 %v746_v7 }
  0x10   :  { %667 = vmatprep.subr.bf16.mxu0 %v747_v8  ;;  %727 = vmatprep.subr.bf16.mxu1 %v747_v8  ;;  %v945_v8 = vld [vmem:[%s1103_s2 + $0x4] ss:$0 sm:$0xff] }
  0x13   :  { %668 = vmatpush3.bf16.msra.mxu0 %v748_v9  ;;  %735 = vmatpush3.bf16.msra.mxu1 %v748_v9 }
  0x14   :  { %669 = vmatprep.subr.bf16.mxu0 %v749_v10  ;;  %728 = vmatprep.subr.bf16.mxu1 %v749_v10 }
  0x17   :  { %670 = vmatpush3.bf16.msra.mxu0 %v750_v13  ;;  %736 = vmatpush3.bf16.msra.mxu1 %v750_v13 }
  0x18   :  { %671 = vmatprep.subr.bf16.mxu0 %v751_v14  ;;  %729 = vmatprep.subr.bf16.mxu1 %v751_v14 }
  0x1b   :  { %672 = vmatpush3.bf16.msra.mxu0 %v752_v15  ;;  %737 = vmatpush3.bf16.msra.mxu1 %v752_v15 }
  0x1c   :  { %673 = vmatprep.subr.bf16.mxu0 %v753_v16  ;;  %730 = vmatprep.subr.bf16.mxu1 %v753_v16 }
  0x1f   :  { %674 = vmatpush3.bf16.msra.mxu0 %v754_v17  ;;  %738 = vmatpush3.bf16.msra.mxu1 %v754_v17 }
  0x22   :  { %316 = vmatmul.mubr.bf16.vlgmr.msra.gmra.mxu0 %v755_v18  ;;  %348 = vmatmul.mubr.bf16.vlgmr.msra.gmra.mxu1 %v758_v19 }
  0x23   :  { %323 = vmatprep.mubr.bf16.mxu0 %v761_v20  ;;  %355 = vmatprep.mubr.bf16.mxu1 %v763_v21 }
  0x2a   :  { %324 = vmatmul.mubr.bf16.gmra.mxu0 %v765_v22  ;;  %356 = vmatmul.mubr.bf16.gmra.mxu1 %v766_v23 }
  0x2b   :  { %331 = vmatprep.mubr.bf16.mxu0 %v767_v24  ;;  %363 = vmatprep.mubr.bf16.mxu1 %v769_v25  ;;  %v478_v25 = vld [vmem:[%s1104_s3 + $0x10] sm:$0xff] }
  0x32   :  { %332 = vmatmul.mubr.bf16.gmra.mxu0 %v771_v26  ;;  %364 = vmatmul.mubr.bf16.gmra.mxu1 %v772_v27  ;;  %v486_v26 = vld [vmem:[%s1104_s3 + $0x50] sm:$0xff] }
  0x33   :  { %339 = vmatprep.mubr.bf16.mxu0 %v773_v28  ;;  %371 = vmatprep.mubr.bf16.mxu1 %v775_v29 }
  0x3a   :  { %340 = vmatmul.mubr.bf16.gmra.mxu0 %v777_v30  ;;  %372 = vmatmul.mubr.bf16.gmra.mxu1 %v778_v31 }
  0xe2   :  { %v675_v32 = vpop.f32.mrf.mxu0  ;;  %v699_v33 = vpop.f32.mrf.mxu1 }
  0xe4   :  { %v676_v34 = vpop.f32.mrf.mxu0  ;;  %v700_v36 = vpop.f32.mrf.mxu1 }
  0xe5   :  { %v677_v37 = vadd.f32 %v676_v34, %v675_v32  ;;  %v701_v38 = vadd.f32 %v700_v36, %v699_v33 }
  0xe6   :  { %v678_v40 = vpop.f32.mrf.mxu0  ;;  %v702_v41 = vpop.f32.mrf.mxu1 }
  0xe7   :  { %v440_v42 = vmul.f32 %v677_v37, %v903_v35  ;;  %v448_v43 = vmul.f32 %v701_v38, %v903_v35 }
  0xe8   :  { %v679_v46 = vpop.f32.mrf.mxu0  ;;  %v703_v47 = vpop.f32.mrf.mxu1 }
  0xe9   :  { %v460_v48 = vadd.f32 %v908_v39, %v440_v42  ;;  %v468_v49 = vadd.f32 %v908_v39, %v448_v43  ;;  %v680_v50 = vadd.f32 %v679_v46, %v678_v40  ;;  %v704_v51 = vadd.f32 %v703_v47, %v702_v41  ;;  %v479_v42 = vld [vmem:[%s1104_s3 + $0x18] sm:$0xff] }
  0xea   :  { %v681_v53 = vpop.f32.mrf.mxu0  ;;  %v705_v54 = vpop.f32.mrf.mxu1 }
  0xeb   :  { %v492_v55 = vadd.f32 %v476_v44, %v460_v48  ;;  %v500_v56 = vadd.f32 %v484_v45, %v468_v49  ;;  %v441_v57 = vmul.f32 %v680_v50, %v903_v35  ;;  %v449_v58 = vmul.f32 %v704_v51, %v903_v35  ;;  %v487_v44 = vld [vmem:[%s1104_s3 + $0x58] sm:$0xff] }
  0xec   :  { %v682_v60 = vpop.f32.mrf.mxu0  ;;  %v706_v61 = vpop.f32.mrf.mxu1 }
  0xed   :  { %v512_v62 = vsub.f32 %v492_v55, %v923_v52  ;;  %v520_v63 = vsub.f32 %v500_v56, %v923_v52  ;;  %v461_v0 = vadd.f32 %v908_v39, %v441_v57  ;;  %v469_v2 = vadd.f32 %v908_v39, %v449_v58 }
  0xee   :  { %v683_v4 = vadd.f32 %v682_v60, %v681_v53  ;;  %v707_v5 = vadd.f32 %v706_v61, %v705_v54  ;;  %v684_v6 = vpop.f32.mrf.mxu0  ;;  %v708_v7 = vpop.f32.mrf.mxu1 }
  0xef   :  { %vm528_vm0 = vcmp.gt.f32.partialorder %v512_v62, 0.0  ;;  %v548_v9 = vmul.f32 %v930_v59, %v512_v62  ;;  %vm536_vm1 = vcmp.gt.f32.partialorder %v520_v63, 0.0  ;;  %v556_v10 = vmul.f32 %v930_v59, %v520_v63 }
  0xf0   :  { %v493_v11 = vadd.f32 %v477_v1, %v461_v0  ;;  %v501_v12 = vadd.f32 %v485_v3, %v469_v2  ;;  %v442_v13 = vmul.f32 %v683_v4, %v903_v35  ;;  %v450_v14 = vmul.f32 %v707_v5, %v903_v35  ;;  %v685_v15 = vpop.f32.mrf.mxu0  ;;  %v709_v16 = vpop.f32.mrf.mxu1  ;;  %v480_v4 = vld [vmem:[%s1104_s3 + $0x20] sm:$0xff] }
  0xf1   :  { %v564_v17 = vsel %vm528_vm0, %v512_v62, %v548_v9  ;;  %v572_v18 = vsel %vm536_vm1, %v520_v63, %v556_v10  ;;  %v686_v19 = vadd.f32 %v685_v15, %v684_v6  ;;  %v710_v20 = vadd.f32 %v709_v16, %v708_v7  ;;  %v488_v6 = vld [vmem:[%s1104_s3 + $0x60] sm:$0xff] }
  0xf2   :  { %v584_v21 = vadd.f32 %v945_v8, %v564_v17  ;;  %v592_v22 = vadd.f32 %v945_v8, %v572_v18  ;;  %v513_v23 = vsub.f32 %v493_v11, %v923_v52  ;;  %v521_v24 = vsub.f32 %v501_v12, %v923_v52  ;;  %v687_v27 = vpop.f32.mrf.mxu0  ;;  %v711_v28 = vpop.f32.mrf.mxu1 }
  0xf3   :  { %v462_v29 = vadd.f32 %v908_v39, %v442_v13  ;;  %v470_v30 = vadd.f32 %v908_v39, %v450_v14  ;;  %v443_v31 = vmul.f32 %v686_v19, %v903_v35  ;;  %v451_v32 = vmul.f32 %v710_v20, %v903_v35 }
  0xf4   :  { %600 = vst [vmem:[%s1105_s4] sm:$0xff] %v584_v21  ;;  %608 = vst [vmem:[%s1105_s4 + $0x40] sm:$0xff] %v592_v22  ;;  %vm529_vm2 = vcmp.gt.f32.partialorder %v513_v23, 0.0  ;;  %v549_v33 = vmul.f32 %v930_v59, %v513_v23  ;;  %vm537_vm3 = vcmp.gt.f32.partialorder %v521_v24, 0.0  ;;  %v557_v34 = vmul.f32 %v930_v59, %v521_v24  ;;  %v688_v36 = vpop.f32.mrf.mxu0  ;;  %v712_v37 = vpop.f32.mrf.mxu1 }
  0xf5   :  { %v494_v38 = vadd.f32 %v478_v25, %v462_v29  ;;  %v502_v40 = vadd.f32 %v486_v26, %v470_v30  ;;  %v463_v41 = vadd.f32 %v908_v39, %v443_v31  ;;  %v471_v43 = vadd.f32 %v908_v39, %v451_v32  ;;  %v481_v32 = vld [vmem:[%s1104_s3 + $0x28] sm:$0xff] }
  0xf6   :  { %v565_v45 = vsel %vm529_vm2, %v513_v23, %v549_v33  ;;  %v573_v46 = vsel %vm537_vm3, %v521_v24, %v557_v34  ;;  %v689_v47 = vadd.f32 %v688_v36, %v687_v27  ;;  %v713_v48 = vadd.f32 %v712_v37, %v711_v28  ;;  %v690_v49 = vpop.f32.mrf.mxu0  ;;  %v714_v50 = vpop.f32.mrf.mxu1  ;;  %v489_v33 = vld [vmem:[%s1104_s3 + $0x68] sm:$0xff] }
  0xf7   :  { %v585_v51 = vadd.f32 %v945_v8, %v565_v45  ;;  %v593_v53 = vadd.f32 %v945_v8, %v573_v46  ;;  %v514_v54 = vsub.f32 %v494_v38, %v923_v52  ;;  %v522_v55 = vsub.f32 %v502_v40, %v923_v52 }
  0xf8   :  { %v495_v56 = vadd.f32 %v479_v42, %v463_v41  ;;  %v503_v57 = vadd.f32 %v487_v44, %v471_v43  ;;  %v444_v58 = vmul.f32 %v689_v47, %v903_v35  ;;  %v452_v60 = vmul.f32 %v713_v48, %v903_v35  ;;  %v691_v61 = vpop.f32.mrf.mxu0  ;;  %v715_v62 = vpop.f32.mrf.mxu1  ;;  %v482_v47 = vld [vmem:[%s1104_s3 + $0x30] sm:$0xff] }
  0xf9   :  { %601 = vst [vmem:[%s1105_s4 + $0x8] sm:$0xff] %v585_v51  ;;  %609 = vst [vmem:[%s1105_s4 + $0x48] sm:$0xff] %v593_v53  ;;  %vm530_vm4 = vcmp.gt.f32.partialorder %v514_v54, 0.0  ;;  %v550_v63 = vmul.f32 %v930_v59, %v514_v54  ;;  %vm538_vm5 = vcmp.gt.f32.partialorder %v522_v55, 0.0  ;;  %v558_v0 = vmul.f32 %v930_v59, %v522_v55 }
  0xfa   :  { %v515_v1 = vsub.f32 %v495_v56, %v923_v52  ;;  %v523_v2 = vsub.f32 %v503_v57, %v923_v52  ;;  %v464_v3 = vadd.f32 %v908_v39, %v444_v58  ;;  %v472_v5 = vadd.f32 %v908_v39, %v452_v60  ;;  %v693_v7 = vpop.f32.mrf.mxu0  ;;  %v717_v9 = vpop.f32.mrf.mxu1 }
  0xfb   :  { %v566_v10 = vsel %vm530_vm4, %v514_v54, %v550_v63  ;;  %v574_v11 = vsel %vm538_vm5, %v522_v55, %v558_v0  ;;  %v692_v12 = vadd.f32 %v691_v61, %v690_v49  ;;  %v716_v13 = vadd.f32 %v715_v62, %v714_v50 }
  0xfc   :  { %v586_v14 = vadd.f32 %v945_v8, %v566_v10  ;;  %v594_v15 = vadd.f32 %v945_v8, %v574_v11  ;;  %vm531_vm6 = vcmp.gt.f32.partialorder %v515_v1, 0.0  ;;  %v551_v16 = vmul.f32 %v930_v59, %v515_v1  ;;  %v694_v17 = vpop.f32.mrf.mxu0  ;;  %v718_v18 = vpop.f32.mrf.mxu1 }
  0xfd   :  { %vm539_vm7 = vcmp.gt.f32.partialorder %v523_v2, 0.0  ;;  %v559_v19 = vmul.f32 %v930_v59, %v523_v2  ;;  %v496_v20 = vadd.f32 %v480_v4, %v464_v3  ;;  %v504_v21 = vadd.f32 %v488_v6, %v472_v5  ;;  %v483_v4 = vld [vmem:[%s1104_s3 + $0x38] sm:$0xff] }
  0xfe   :  { %602 = vst [vmem:[%s1105_s4 + $0x10] sm:$0xff] %v586_v14  ;;  %610 = vst [vmem:[%s1105_s4 + $0x50] sm:$0xff] %v594_v15  ;;  %v567_v22 = vsel %vm531_vm6, %v515_v1, %v551_v16  ;;  %v445_v23 = vmul.f32 %v692_v12, %v903_v35  ;;  %v453_v24 = vmul.f32 %v716_v13, %v903_v35  ;;  %v696_v26 = vpop.f32.mrf.mxu0  ;;  %v720_v27 = vpop.f32.mrf.mxu1  ;;  %v491_v6 = vld [vmem:[%s1104_s3 + $0x78] sm:$0xff] }
  0xff   :  { %v695_v25 = vadd.f32 %v694_v17, %v693_v7  ;;  %v587_v28 = vadd.f32 %v945_v8, %v567_v22  ;;  %v575_v29 = vsel %vm539_vm7, %v523_v2, %v559_v19  ;;  %v516_v30 = vsub.f32 %v496_v20, %v923_v52 }
 0x100   :  { %v524_v31 = vsub.f32 %v504_v21, %v923_v52  ;;  %v595_v34 = vadd.f32 %v945_v8, %v575_v29  ;;  %v465_v36 = vadd.f32 %v908_v39, %v445_v23  ;;  %v473_v37 = vadd.f32 %v908_v39, %v453_v24  ;;  %v697_v40 = vpop.f32.mrf.mxu0  ;;  %v721_v41 = vpop.f32.mrf.mxu1 }
 0x101   :  { %v446_v38 = vmul.f32 %v695_v25, %v903_v35  ;;  %603 = vst [vmem:[%s1105_s4 + $0x18] sm:$0xff] %v587_v28  ;;  %vm532_vm8 = vcmp.gt.f32.partialorder %v516_v30, 0.0  ;;  %v552_v42 = vmul.f32 %v930_v59, %v516_v30  ;;  %v719_v48 = vadd.f32 %v718_v18, %v717_v9 }
 0x102   :  { %vm540_vm9 = vcmp.gt.f32.partialorder %v524_v31, 0.0  ;;  %v560_v43 = vmul.f32 %v930_v59, %v524_v31  ;;  %611 = vst [vmem:[%s1105_s4 + $0x58] sm:$0xff] %v595_v34  ;;  %v497_v44 = vadd.f32 %v481_v32, %v465_v36  ;;  %v505_v45 = vadd.f32 %v489_v33, %v473_v37 }
 0x103   :  { %v466_v46 = vadd.f32 %v908_v39, %v446_v38  ;;  %v568_v49 = vsel %vm532_vm8, %v516_v30, %v552_v42  ;;  %v698_v51 = vadd.f32 %v697_v40, %v696_v26  ;;  %v722_v53 = vadd.f32 %v721_v41, %v720_v27 }
 0x104   :  { %v576_v50 = vsel %vm540_vm9, %v524_v31, %v560_v43  ;;  %v588_v54 = vadd.f32 %v945_v8, %v568_v49  ;;  %v517_v56 = vsub.f32 %v497_v44, %v923_v52  ;;  %v525_v57 = vsub.f32 %v505_v45, %v923_v52 }
 0x105   :  { %v596_v55 = vadd.f32 %v945_v8, %v576_v50  ;;  %v498_v58 = vadd.f32 %v482_v47, %v466_v46  ;;  %v454_v60 = vmul.f32 %v719_v48, %v903_v35  ;;  %v447_v61 = vmul.f32 %v698_v51, %v903_v35 }
 0x106   :  { %v455_v62 = vmul.f32 %v722_v53, %v903_v35  ;;  %604 = vst [vmem:[%s1105_s4 + $0x20] sm:$0xff] %v588_v54  ;;  %vm533_vm10 = vcmp.gt.f32.partialorder %v517_v56, 0.0  ;;  %v553_v63 = vmul.f32 %v930_v59, %v517_v56  ;;  %vm541_vm11 = vcmp.gt.f32.partialorder %v525_v57, 0.0  ;;  %v490_v35 = vld [vmem:[%s1104_s3 + $0x70] sm:$0xff] }
 0x107   :  { %612 = vst [vmem:[%s1105_s4 + $0x60] sm:$0xff] %v596_v55  ;;  %v561_v0 = vmul.f32 %v930_v59, %v525_v57  ;;  %v518_v1 = vsub.f32 %v498_v58, %v923_v52  ;;  %v474_v2 = vadd.f32 %v908_v39, %v454_v60  ;;  %v467_v3 = vadd.f32 %v908_v39, %v447_v61 }
 0x108   :  { %v475_v5 = vadd.f32 %v908_v39, %v455_v62  ;;  %v569_v7 = vsel %vm533_vm10, %v517_v56, %v553_v63 }
 0x109   :  { %v577_v9 = vsel %vm541_vm11, %v525_v57, %v561_v0  ;;  %v589_v10 = vadd.f32 %v945_v8, %v569_v7  ;;  %vm534_vm12 = vcmp.gt.f32.partialorder %v518_v1, 0.0  ;;  %v554_v12 = vmul.f32 %v930_v59, %v518_v1 }
 0x10a   :  { %v597_v11 = vadd.f32 %v945_v8, %v577_v9  ;;  %v506_v13 = vadd.f32 %v490_v35, %v474_v2  ;;  %v499_v14 = vadd.f32 %v483_v4, %v467_v3  ;;  %v507_v15 = vadd.f32 %v491_v6, %v475_v5 }
 0x10b   :  { %605 = vst [vmem:[%s1105_s4 + $0x28] sm:$0xff] %v589_v10  ;;  %v570_v39 = vsel %vm534_vm12, %v518_v1, %v554_v12 }
 0x10c   :  { %613 = vst [vmem:[%s1105_s4 + $0x68] sm:$0xff] %v597_v11  ;;  %v590_v16 = vadd.f32 %v945_v8, %v570_v39  ;;  %v526_v17 = vsub.f32 %v506_v13, %v923_v52  ;;  %v519_v18 = vsub.f32 %v499_v14, %v923_v52  ;;  %v527_v19 = vsub.f32 %v507_v15, %v923_v52 }
 0x10e   :  { %606 = vst [vmem:[%s1105_s4 + $0x30] sm:$0xff] %v590_v16  ;;  %vm542_vm13 = vcmp.gt.f32.partialorder %v526_v17, 0.0  ;;  %v562_v20 = vmul.f32 %v930_v59, %v526_v17  ;;  %vm535_vm14 = vcmp.gt.f32.partialorder %v519_v18, 0.0  ;;  %v555_v21 = vmul.f32 %v930_v59, %v519_v18 }
 0x10f   :  { %vm543_vm15 = vcmp.gt.f32.partialorder %v527_v19, 0.0  ;;  %v563_v22 = vmul.f32 %v930_v59, %v527_v19 }
 0x110   :  { %v578_v23 = vsel %vm542_vm13, %v526_v17, %v562_v20  ;;  %v571_v24 = vsel %vm535_vm14, %v519_v18, %v555_v21 }
 0x111   :  { %v598_v25 = vadd.f32 %v945_v8, %v578_v23  ;;  %v591_v26 = vadd.f32 %v945_v8, %v571_v24  ;;  %v579_v52 = vsel %vm543_vm15, %v527_v19, %v563_v22 }
 0x112   :  { %v599_v27 = vadd.f32 %v945_v8, %v579_v52 }
 0x113   :  { %614 = vst [vmem:[%s1105_s4 + $0x70] sm:$0xff] %v598_v25  ;;  %607 = vst [vmem:[%s1105_s4 + $0x38] sm:$0xff] %v591_v26 }
 0x114   :  { %615 = vst [vmem:[%s1105_s4 + $0x78] sm:$0xff] %v599_v27 }

// kernel: _forward_impl.11
= control target key start
LH: loop header
LB: loop body
LE: loop exit
PB: predicated region body
PF: predicated region fallthrough
CT: control target
= control target key end

     0   :  { %s1447_s1 = inlined_call_operand.vmem [shape: bf16[384,128], index: 1, kind: input, shape index: {}]   ;;  %s1448_s0 = inlined_call_operand.vmem [shape: bf16[128,384], index: 0, kind: input, shape index: {}]   ;;  %s1449_s2 = inlined_call_operand.vmem [shape: f32[8,128], index: 2, kind: input, shape index: {}]   ;;  %s1450_s3 = inlined_call_operand.vmem [shape: f32[128,128], index: 3, kind: input, shape index: {}]   ;;  %s1451_s4 = inlined_call_operand.vmem [shape: f32[128,128], index: 4, kind: output, shape index: {}]  }
   0x1   :  { %v1012_v0 = vld [vmem:[%s1447_s1 + $0x78] sm:$0xff]   ;;  %v1015_v3 = vld [vmem:[%s1447_s1 + $0x70] sm:$0xff]   ;;  %v1018_v6 = vld [vmem:[%s1447_s1 + $0x68] sm:$0xff]  }
   0x2   :  { %v1013_v1 = vld [vmem:[%s1447_s1 + $0x38] sm:$0xff]   ;;  %900 = vmatprep.subr.bf16.mxu0 %v1012_v0  ;;  %v1016_v4 = vld [vmem:[%s1447_s1 + $0x30] sm:$0xff]   ;;  %v1019_v7 = vld [vmem:[%s1447_s1 + $0x28] sm:$0xff]  }
   0x3   :  { %v1014_v2 = vld [vmem:[%s1447_s1 + $0xb8] sm:$0xff]   ;;  %901 = vmatpush3.bf16.msra.mxu0 %v1013_v1  ;;  %v1017_v5 = vld [vmem:[%s1447_s1 + $0xb0] sm:$0xff]   ;;  %v1020_v8 = vld [vmem:[%s1447_s1 + $0xa8] sm:$0xff]  }
   0x4   :  { %980 = vmatprep.subr.bf16.mxu1 %v1014_v2  ;;  %902 = vmatprep.subr.bf16.mxu0 %v1015_v3  ;;  %v1021_v9 = vld [vmem:[%s1447_s1 + $0x60] sm:$0xff]   ;;  %v1024_v12 = vld [vmem:[%s1447_s1 + $0x58] sm:$0xff]   ;;  %v1027_v15 = vld [vmem:[%s1447_s1 + $0x50] sm:$0xff]  }
   0x5   :  { %981 = vmatpush3.bf16.msra.mxu1 %v1014_v2  ;;  %v1022_v10 = vld [vmem:[%s1447_s1 + $0x20] sm:$0xff]   ;;  %v1026_v13 = vld [vmem:[%s1447_s1 + $0x98] sm:$0xff]   ;;  %v1029_v16 = vld [vmem:[%s1447_s1 + $0x90] sm:$0xff]  }
   0x6   :  { %982 = vmatprep.subr.bf16.mxu1 %v1017_v5  ;;  %v1023_v11 = vld [vmem:[%s1447_s1 + $0xa0] sm:$0xff]   ;;  %v1025_v14 = vld [vmem:[%s1447_s1 + $0x18] sm:$0xff]   ;;  %v1028_v17 = vld [vmem:[%s1447_s1 + $0x10] sm:$0xff]  }
   0x7   :  { %903 = vmatpush3.bf16.msra.mxu0 %v1016_v4  ;;  %v1030_v18 = vld [vmem:[%s1447_s1 + $0x48] sm:$0xff]   ;;  %v1033_v21 = vld [vmem:[%s1447_s1 + $0x40] sm:$0xff]   ;;  %v1048_v32 = vld [vmem:[%s1448_s0 + $0x50] ss:$12 sps:$4 sm:$0xff]  }
   0x8   :  { %904 = vmatprep.subr.bf16.mxu0 %v1018_v6  ;;  %v1031_v19 = vld [vmem:[%s1447_s1 + $0x8] sm:$0xff]   ;;  %v1035_v22 = vld [vmem:[%s1447_s1 + $0x80] sm:$0xff]   ;;  %v1046_v34 = vld [vmem:[%s1448_s0 + $0x30] ss:$12 sps:$4 sm:$0xff]  }
   0x9   :  { %983 = vmatpush3.bf16.msra.mxu1 %v1017_v5  ;;  %v1032_v20 = vld [vmem:[%s1447_s1 + $0x88] sm:$0xff]   ;;  %v1038_v23 = vld [vmem:[%s1448_s0 + $0x4] ss:$12 sps:$4 sm:$0xff]   ;;  %v1044_v31 = vld [vmem:[%s1448_s0 + $0x34] ss:$12 sps:$4 sm:$0xff]  }
   0xa   :  { %984 = vmatprep.subr.bf16.mxu1 %v1020_v8  ;;  %v1039_v24 = vld [vmem:[%s1448_s0 + $0x8] ss:$12 sps:$4 sm:$0xff]   ;;  %v1034_v25 = vld [vmem:[%s1447_s1] sm:$0xff]   ;;  %443 = vmatprep.mubr.bf16.mxu0 %v1038_v23  ;;  %v1049_v35 = vld [vmem:[%s1448_s0 + $0x4c] ss:$12 sps:$4 sm:$0xff]  }
   0xb   :  { %905 = vmatpush3.bf16.msra.mxu0 %v1019_v7  ;;  %996 = vmatprep.mubr.bf16.mxu1 %v1039_v24  ;;  %v1036_v26 = vld [vmem:[%s1448_s0] ss:$12 sps:$4 sm:$0xff]   ;;  %v1041_v27 = vld [vmem:[%s1448_s0 + $0x1c] ss:$12 sps:$4 sm:$0xff]   ;;  %v1047_v29 = vld [vmem:[%s1448_s0 + $0x38] ss:$12 sps:$4 sm:$0xff]  }
   0xc   :  { %906 = vmatprep.subr.bf16.mxu0 %v1021_v9  ;;  %v1040_v28 = vld [vmem:[%s1448_s0 + $0x20] ss:$12 sps:$4 sm:$0xff]   ;;  %v1043_v30 = vld [vmem:[%s1448_s0 + $0x18] ss:$12 sps:$4 sm:$0xff]   ;;  %v1055_v33 = vld [vmem:[%s1448_s0 + $0x68] ss:$12 sps:$4 sm:$0xff]  }
   0xd   :  { %985 = vmatpush3.bf16.msra.mxu1 %v1020_v8  ;;  %v1056_v36 = vld [vmem:[%s1448_s0 + $0x80] ss:$12 sps:$4 sm:$0xff]   ;;  %v1063_v37 = vld [vmem:[%s1448_s0 + $0x98] ss:$12 sps:$4 sm:$0xff]   ;;  %v1051_v38 = vld [vmem:[%s1448_s0 + $0x48] ss:$12 sps:$4 sm:$0xff]  }
   0xe   :  { %986 = vmatprep.subr.bf16.mxu1 %v1023_v11  ;;  %v1052_v39 = vld [vmem:[%s1448_s0 + $0x64] ss:$12 sps:$4 sm:$0xff]   ;;  %v1054_v41 = vld [vmem:[%s1448_s0 + $0x60] ss:$12 sps:$4 sm:$0xff]   ;;  %v1057_v42 = vld [vmem:[%s1448_s0 + $0x7c] ss:$12 sps:$4 sm:$0xff]  }
   0xf   :  { %907 = vmatpush3.bf16.msra.mxu0 %v1022_v10  ;;  %v1064_v40 = vld [vmem:[%s1448_s0 + $0xb0] ss:$12 sps:$4 sm:$0xff]   ;;  %v1059_v43 = vld [vmem:[%s1448_s0 + $0x78] ss:$12 sps:$4 sm:$0xff]   ;;  %v1060_v44 = vld [vmem:[%s1448_s0 + $0x94] ss:$12 sps:$4 sm:$0xff]  }
  0x10   :  { %908 = vmatprep.subr.bf16.mxu0 %v1024_v12  ;;  %v1062_v45 = vld [vmem:[%s1448_s0 + $0x90] ss:$12 sps:$4 sm:$0xff]   ;;  %v1065_v46 = vld [vmem:[%s1448_s0 + $0xac] ss:$12 sps:$4 sm:$0xff]   ;;  %v1067_v47 = vld [vmem:[%s1448_s0 + $0xa8] ss:$12 sps:$4 sm:$0xff]  }
  0x11   :  { %987 = vmatpush3.bf16.msra.mxu1 %v1023_v11  ;;  %v1240_v54 = vld [vmem:[%s1449_s2] ss:$0 sm:$0xff]  ;;  %v1245_v56 = vld [vmem:[%s1449_s2 + $0x1] ss:$0 sm:$0xff]  ;;  %v1255_v2 = vld [vmem:[%s1449_s2 + $0x2] ss:$0 sm:$0xff] }
  0x12   :  { %988 = vmatprep.subr.bf16.mxu1 %v1026_v13  ;;  %v701_v61 = vld [vmem:[%s1450_s3] sm:$0xff]  ;;  %v702_v9 = vld [vmem:[%s1450_s3 + $0x8] sm:$0xff] }
  0x13   :  { %909 = vmatpush3.bf16.msra.mxu0 %v1025_v14  ;;  %v1263_v8 = vld [vmem:[%s1449_s2 + $0x3] ss:$0 sm:$0xff] }
  0x14   :  { %910 = vmatprep.subr.bf16.mxu0 %v1027_v15 }
  0x15   :  { %989 = vmatpush3.bf16.msra.mxu1 %v1026_v13 }
  0x16   :  { %990 = vmatprep.subr.bf16.mxu1 %v1029_v16 }
  0x17   :  { %911 = vmatpush3.bf16.msra.mxu0 %v1028_v17 }
  0x18   :  { %912 = vmatprep.subr.bf16.mxu0 %v1030_v18 }
  0x19   :  { %991 = vmatpush3.bf16.msra.mxu1 %v1029_v16  ;;  %v1273_v16 = vld [vmem:[%s1449_s2 + $0x4] ss:$0 sm:$0xff] }
  0x1a   :  { %992 = vmatprep.subr.bf16.mxu1 %v1032_v20 }
  0x1b   :  { %913 = vmatpush3.bf16.msra.mxu0 %v1031_v19 }
  0x1c   :  { %914 = vmatprep.subr.bf16.mxu0 %v1033_v21 }
  0x1d   :  { %993 = vmatpush3.bf16.msra.mxu1 %v1032_v20  ;;  %v703_v20 = vld [vmem:[%s1450_s3 + $0x10] sm:$0xff] }
  0x1e   :  { %994 = vmatprep.subr.bf16.mxu1 %v1035_v22 }
  0x1f   :  { %915 = vmatpush3.bf16.msra.mxu0 %v1034_v25 }
  0x21   :  { %995 = vmatpush3.bf16.msra.mxu1 %v1035_v22 }
  0x22   :  { %444 = vmatmul.mubr.bf16.vlgmr.msra.gmra.mxu0 %v1036_v26 }
  0x23   :  { %451 = vmatprep.mubr.bf16.mxu0 %v1041_v27 }
  0x24   :  { %997 = vmatmul.mubr.bf16.vlgmr.msra.gmra.mxu1 %v1040_v28 }
  0x25   :  { %1000 = vmatprep.mubr.bf16.mxu1 %v1047_v29 }
  0x2a   :  { %452 = vmatmul.mubr.bf16.gmra.mxu0 %v1043_v30 }
  0x2b   :  { %459 = vmatprep.mubr.bf16.mxu0 %v1044_v31 }
  0x2c   :  { %1001 = vmatmul.mubr.bf16.gmra.mxu1 %v1048_v32 }
  0x2d   :  { %1004 = vmatprep.mubr.bf16.mxu1 %v1055_v33 }
  0x32   :  { %460 = vmatmul.mubr.bf16.gmra.mxu0 %v1046_v34 }
  0x33   :  { %467 = vmatprep.mubr.bf16.mxu0 %v1049_v35 }
  0x34   :  { %1005 = vmatmul.mubr.bf16.gmra.mxu1 %v1056_v36 }
  0x35   :  { %1008 = vmatprep.mubr.bf16.mxu1 %v1063_v37  ;;  %v704_v37 = vld [vmem:[%s1450_s3 + $0x18] sm:$0xff] }
  0x3a   :  { %468 = vmatmul.mubr.bf16.gmra.mxu0 %v1051_v38 }
  0x3b   :  { %475 = vmatprep.mubr.bf16.mxu0 %v1052_v39 }
  0x3c   :  { %1009 = vmatmul.mubr.bf16.gmra.mxu1 %v1064_v40 }
  0x42   :  { %476 = vmatmul.mubr.bf16.gmra.mxu0 %v1054_v41 }
  0x43   :  { %483 = vmatprep.mubr.bf16.mxu0 %v1057_v42 }
  0x4a   :  { %484 = vmatmul.mubr.bf16.gmra.mxu0 %v1059_v43 }
  0x4b   :  { %491 = vmatprep.mubr.bf16.mxu0 %v1060_v44 }
  0x52   :  { %492 = vmatmul.mubr.bf16.gmra.mxu0 %v1062_v45 }
  0x53   :  { %499 = vmatprep.mubr.bf16.mxu0 %v1065_v46 }
  0x5a   :  { %500 = vmatmul.mubr.bf16.gmra.mxu0 %v1067_v47  ;;  %v705_v47 = vld [vmem:[%s1450_s3 + $0x20] sm:$0xff] }
  0xe2   :  { %v916_v48 = vpop.f32.mrf.mxu0 }
  0xe4   :  { %v917_v49 = vpop.f32.mrf.mxu0  ;;  %v998_v50 = vpop.f32.mrf.mxu1 }
  0xe5   :  { %v918_v51 = vadd.f32 %v917_v49, %v916_v48 }
  0xe6   :  { %v919_v52 = vpop.f32.mrf.mxu0  ;;  %v542_v53 = vpop.f32.mrf.mxu1 }
  0xe7   :  { %v543_v55 = vadd.f32 %v918_v51, %v542_v53 }
  0xe8   :  { %v920_v57 = vpop.f32.mrf.mxu0  ;;  %v999_v58 = vpop.f32.mrf.mxu1 }
  0xe9   :  { %v665_v59 = vmul.f32 %v1240_v54, %v543_v55  ;;  %v921_v60 = vadd.f32 %v920_v57, %v919_v52 }
  0xea   :  { %v922_v62 = vpop.f32.mrf.mxu0  ;;  %v545_v63 = vpop.f32.mrf.mxu1 }
  0xeb   :  { %v685_v0 = vadd.f32 %v1245_v56, %v665_v59  ;;  %v546_v1 = vadd.f32 %v921_v60, %v545_v63 }
  0xec   :  { %v923_v3 = vpop.f32.mrf.mxu0  ;;  %v1257_v4 = vpop.f32.mrf.mxu1 }
  0xed   :  { %v717_v5 = vadd.f32 %v701_v61, %v685_v0  ;;  %v666_v6 = vmul.f32 %v1240_v54, %v546_v1  ;;  %v924_v7 = vadd.f32 %v923_v3, %v922_v62  ;;  %v706_v62 = vld [vmem:[%s1450_s3 + $0x28] sm:$0xff] }
  0xee   :  { %v925_v10 = vpop.f32.mrf.mxu0  ;;  %v558_v15 = vpop.f32.mrf.mxu1 }
  0xef   :  { %v737_v11 = vsub.f32 %v717_v5, %v1255_v2  ;;  %v686_v12 = vadd.f32 %v1245_v56, %v666_v6  ;;  %v551_v13 = vadd.f32 %v998_v50, %v924_v7 }
  0xf0   :  { %v926_v14 = vpop.f32.mrf.mxu0  ;;  %v1003_v29 = vpop.f32.mrf.mxu1 }
  0xf1   :  { %vm753_vm0 = vcmp.gt.f32.partialorder %v737_v11, 0.0  ;;  %v773_v17 = vmul.f32 %v1263_v8, %v737_v11  ;;  %v718_v18 = vadd.f32 %v702_v9, %v686_v12  ;;  %v667_v19 = vmul.f32 %v1240_v54, %v551_v13 }
  0xf2   :  { %v927_v21 = vadd.f32 %v926_v14, %v925_v10  ;;  %v928_v22 = vpop.f32.mrf.mxu0  ;;  %v561_v42 = vpop.f32.mrf.mxu1 }
  0xf3   :  { %v789_v23 = vsel %vm753_vm0, %v737_v11, %v773_v17  ;;  %v738_v24 = vsub.f32 %v718_v18, %v1255_v2  ;;  %v687_v25 = vadd.f32 %v1245_v56, %v667_v19  ;;  %v707_v17 = vld [vmem:[%s1450_s3 + $0x30] sm:$0xff] }
  0xf4   :  { %v809_v26 = vadd.f32 %v1273_v16, %v789_v23  ;;  %v554_v27 = vadd.f32 %v999_v58, %v927_v21  ;;  %v929_v28 = vpop.f32.mrf.mxu0  ;;  %v1305_v57 = vpop.f32.mrf.mxu1 }
  0xf5   :  { %vm754_vm1 = vcmp.gt.f32.partialorder %v738_v24, 0.0  ;;  %v774_v30 = vmul.f32 %v1263_v8, %v738_v24  ;;  %v719_v31 = vadd.f32 %v703_v20, %v687_v25  ;;  %v930_v32 = vadd.f32 %v929_v28, %v928_v22 }
  0xf6   :  { %825 = vst [vmem:[%s1451_s4] sm:$0xff] %v809_v26  ;;  %v668_v33 = vmul.f32 %v1240_v54, %v554_v27  ;;  %v931_v34 = vpop.f32.mrf.mxu0  ;;  %v574_v7 = vpop.f32.mrf.mxu1 }
  0xf7   :  { %v790_v35 = vsel %vm754_vm1, %v738_v24, %v774_v30  ;;  %v739_v36 = vsub.f32 %v719_v31, %v1255_v2  ;;  %v559_v38 = vadd.f32 %v930_v32, %v558_v15  ;;  %v708_v30 = vld [vmem:[%s1450_s3 + $0x38] sm:$0xff] }
  0xf8   :  { %v810_v39 = vadd.f32 %v1273_v16, %v790_v35  ;;  %v688_v40 = vadd.f32 %v1245_v56, %v668_v33  ;;  %v932_v41 = vpop.f32.mrf.mxu0  ;;  %v1007_v22 = vpop.f32.mrf.mxu1 }
  0xf9   :  { %vm755_vm2 = vcmp.gt.f32.partialorder %v739_v36, 0.0  ;;  %v775_v43 = vmul.f32 %v1263_v8, %v739_v36  ;;  %v669_v44 = vmul.f32 %v1240_v54, %v559_v38  ;;  %v933_v45 = vadd.f32 %v932_v41, %v931_v34 }
  0xfa   :  { %826 = vst [vmem:[%s1451_s4 + $0x8] sm:$0xff] %v810_v39  ;;  %v720_v46 = vadd.f32 %v704_v37, %v688_v40  ;;  %v934_v48 = vpop.f32.mrf.mxu0  ;;  %v577_v35 = vpop.f32.mrf.mxu1  ;;  %v709_v40 = vld [vmem:[%s1450_s3 + $0x40] sm:$0xff] }
  0xfb   :  { %v791_v49 = vsel %vm755_vm2, %v739_v36, %v775_v43  ;;  %v689_v50 = vadd.f32 %v1245_v56, %v669_v44  ;;  %v562_v51 = vadd.f32 %v933_v45, %v561_v42 }
  0xfc   :  { %v811_v52 = vadd.f32 %v1273_v16, %v791_v49  ;;  %v740_v53 = vsub.f32 %v720_v46, %v1255_v2  ;;  %v935_v55 = vpop.f32.mrf.mxu0 }
  0xfd   :  { %v721_v58 = vadd.f32 %v705_v47, %v689_v50  ;;  %v670_v59 = vmul.f32 %v1240_v54, %v562_v51  ;;  %v936_v60 = vadd.f32 %v935_v55, %v934_v48  ;;  %v1351_v47 = vpop.f32.mrf.mxu1 }
  0xfe   :  { %827 = vst [vmem:[%s1451_s4 + $0x10] sm:$0xff] %v811_v52  ;;  %vm756_vm3 = vcmp.gt.f32.partialorder %v740_v53, 0.0  ;;  %v776_v61 = vmul.f32 %v1263_v8, %v740_v53  ;;  %v937_v63 = vpop.f32.mrf.mxu0 }
  0xff   :  { %v741_v0 = vsub.f32 %v721_v58, %v1255_v2  ;;  %v690_v1 = vadd.f32 %v1245_v56, %v670_v59  ;;  %v567_v3 = vadd.f32 %v1257_v4, %v936_v60 }
 0x100   :  { %v792_v5 = vsel %vm756_vm3, %v740_v53, %v776_v61  ;;  %v938_v6 = vpop.f32.mrf.mxu0  ;;  %v710_v53 = vld [vmem:[%s1450_s3 + $0x48] sm:$0xff] }
 0x101   :  { %v812_v9 = vadd.f32 %v1273_v16, %v792_v5  ;;  %vm757_vm4 = vcmp.gt.f32.partialorder %v741_v0, 0.0  ;;  %v777_v10 = vmul.f32 %v1263_v8, %v741_v0  ;;  %v722_v11 = vadd.f32 %v706_v62, %v690_v1 }
 0x102   :  { %v671_v12 = vmul.f32 %v1240_v54, %v567_v3  ;;  %v939_v13 = vadd.f32 %v938_v6, %v937_v63  ;;  %v940_v14 = vpop.f32.mrf.mxu0  ;;  %v590_v63 = vpop.f32.mrf.mxu1 }
 0x103   :  { %828 = vst [vmem:[%s1451_s4 + $0x18] sm:$0xff] %v812_v9  ;;  %v793_v15 = vsel %vm757_vm4, %v741_v0, %v777_v10  ;;  %v742_v4 = vsub.f32 %v722_v11, %v1255_v2  ;;  %v711_v10 = vld [vmem:[%s1450_s3 + $0x50] sm:$0xff] }
 0x104   :  { %v813_v18 = vadd.f32 %v1273_v16, %v793_v15  ;;  %v691_v19 = vadd.f32 %v1245_v56, %v671_v12  ;;  %v570_v20 = vadd.f32 %v1003_v29, %v939_v13  ;;  %v941_v21 = vpop.f32.mrf.mxu0  ;;  %v1011_v15 = vpop.f32.mrf.mxu1 }
 0x105   :  { %vm758_vm5 = vcmp.gt.f32.partialorder %v742_v4, 0.0  ;;  %v778_v23 = vmul.f32 %v1263_v8, %v742_v4  ;;  %v942_v24 = vadd.f32 %v941_v21, %v940_v14 }
 0x106   :  { %829 = vst [vmem:[%s1451_s4 + $0x20] sm:$0xff] %v813_v18  ;;  %v723_v25 = vadd.f32 %v707_v17, %v691_v19  ;;  %v672_v26 = vmul.f32 %v1240_v54, %v570_v20  ;;  %v943_v27 = vpop.f32.mrf.mxu0 }
 0x107   :  { %v794_v28 = vsel %vm758_vm5, %v742_v4, %v778_v23  ;;  %v575_v29 = vadd.f32 %v942_v24, %v574_v7  ;;  %v712_v23 = vld [vmem:[%s1450_s3 + $0x58] sm:$0xff] }
 0x108   :  { %v814_v31 = vadd.f32 %v1273_v16, %v794_v28  ;;  %v743_v32 = vsub.f32 %v723_v25, %v1255_v2  ;;  %v692_v33 = vadd.f32 %v1245_v56, %v672_v26  ;;  %v944_v34 = vpop.f32.mrf.mxu0  ;;  %v593_v28 = vpop.f32.mrf.mxu1 }
 0x109   :  { %v673_v36 = vmul.f32 %v1240_v54, %v575_v29  ;;  %v945_v37 = vadd.f32 %v944_v34, %v943_v27 }
 0x10a   :  { %830 = vst [vmem:[%s1451_s4 + $0x28] sm:$0xff] %v814_v31  ;;  %vm759_vm6 = vcmp.gt.f32.partialorder %v743_v32, 0.0  ;;  %v779_v38 = vmul.f32 %v1263_v8, %v743_v32  ;;  %v724_v39 = vadd.f32 %v708_v30, %v692_v33  ;;  %v946_v41 = vpop.f32.mrf.mxu0  ;;  %v713_v33 = vld [vmem:[%s1450_s3 + $0x60] sm:$0xff] }
 0x10b   :  { %v693_v42 = vadd.f32 %v1245_v56, %v673_v36  ;;  %v578_v43 = vadd.f32 %v945_v37, %v577_v35 }
 0x10c   :  { %v795_v44 = vsel %vm759_vm6, %v743_v32, %v779_v38  ;;  %v744_v45 = vsub.f32 %v724_v39, %v1255_v2  ;;  %v947_v46 = vpop.f32.mrf.mxu0 }
 0x10d   :  { %v815_v48 = vadd.f32 %v1273_v16, %v795_v44  ;;  %v725_v49 = vadd.f32 %v709_v40, %v693_v42  ;;  %v674_v50 = vmul.f32 %v1240_v54, %v578_v43  ;;  %v948_v51 = vadd.f32 %v947_v46, %v946_v41 }
 0x10e   :  { %vm760_vm7 = vcmp.gt.f32.partialorder %v744_v45, 0.0  ;;  %v780_v52 = vmul.f32 %v1263_v8, %v744_v45  ;;  %v949_v55 = vpop.f32.mrf.mxu0 }
 0x10f   :  { %831 = vst [vmem:[%s1451_s4 + $0x30] sm:$0xff] %v815_v48  ;;  %v745_v58 = vsub.f32 %v725_v49, %v1255_v2  ;;  %v694_v59 = vadd.f32 %v1245_v56, %v674_v50  ;;  %v583_v60 = vadd.f32 %v1305_v57, %v948_v51 }
 0x110   :  { %v796_v61 = vsel %vm760_vm7, %v744_v45, %v780_v52  ;;  %v950_v62 = vpop.f32.mrf.mxu0  ;;  %v714_v45 = vld [vmem:[%s1450_s3 + $0x68] sm:$0xff] }
 0x111   :  { %v816_v0 = vadd.f32 %v1273_v16, %v796_v61  ;;  %vm761_vm8 = vcmp.gt.f32.partialorder %v745_v58, 0.0  ;;  %v781_v1 = vmul.f32 %v1263_v8, %v745_v58  ;;  %v726_v3 = vadd.f32 %v710_v53, %v694_v59 }
 0x112   :  { %v675_v5 = vmul.f32 %v1240_v54, %v583_v60  ;;  %v951_v6 = vadd.f32 %v950_v62, %v949_v55  ;;  %v952_v7 = vpop.f32.mrf.mxu0 }
 0x113   :  { %832 = vst [vmem:[%s1451_s4 + $0x38] sm:$0xff] %v816_v0  ;;  %v797_v9 = vsel %vm761_vm8, %v745_v58, %v781_v1  ;;  %v746_v57 = vsub.f32 %v726_v3, %v1255_v2 }
 0x114   :  { %v817_v11 = vadd.f32 %v1273_v16, %v797_v9  ;;  %v695_v12 = vadd.f32 %v1245_v56, %v675_v5  ;;  %v586_v13 = vadd.f32 %v1007_v22, %v951_v6  ;;  %v953_v14 = vpop.f32.mrf.mxu0  ;;  %v716_v9 = vld [vmem:[%s1450_s3 + $0x78] sm:$0xff] }
 0x115   :  { %vm762_vm9 = vcmp.gt.f32.partialorder %v746_v57, 0.0  ;;  %v782_v4 = vmul.f32 %v1263_v8, %v746_v57  ;;  %v954_v17 = vadd.f32 %v953_v14, %v952_v7 }
 0x116   :  { %833 = vst [vmem:[%s1451_s4 + $0x40] sm:$0xff] %v817_v11  ;;  %v727_v18 = vadd.f32 %v711_v10, %v695_v12  ;;  %v676_v19 = vmul.f32 %v1240_v54, %v586_v13  ;;  %v955_v20 = vpop.f32.mrf.mxu0 }
 0x117   :  { %v798_v21 = vsel %vm762_vm9, %v746_v57, %v782_v4  ;;  %v591_v22 = vadd.f32 %v954_v17, %v590_v63 }
 0x118   :  { %v818_v24 = vadd.f32 %v1273_v16, %v798_v21  ;;  %v747_v25 = vsub.f32 %v727_v18, %v1255_v2  ;;  %v696_v26 = vadd.f32 %v1245_v56, %v676_v19  ;;  %v956_v27 = vpop.f32.mrf.mxu0 }
 0x119   :  { %v677_v30 = vmul.f32 %v1240_v54, %v591_v22  ;;  %v957_v29 = vadd.f32 %v956_v27, %v955_v20 }
 0x11a   :  { %834 = vst [vmem:[%s1451_s4 + $0x48] sm:$0xff] %v818_v24  ;;  %vm763_vm10 = vcmp.gt.f32.partialorder %v747_v25, 0.0  ;;  %v783_v31 = vmul.f32 %v1263_v8, %v747_v25  ;;  %v728_v32 = vadd.f32 %v712_v23, %v696_v26  ;;  %v958_v34 = vpop.f32.mrf.mxu0 }
 0x11b   :  { %v697_v35 = vadd.f32 %v1245_v56, %v677_v30  ;;  %v594_v36 = vadd.f32 %v957_v29, %v593_v28 }
 0x11c   :  { %v799_v37 = vsel %vm763_vm10, %v747_v25, %v783_v31  ;;  %v748_v38 = vsub.f32 %v728_v32, %v1255_v2  ;;  %v959_v39 = vpop.f32.mrf.mxu0 }
 0x11d   :  { %v819_v40 = vadd.f32 %v1273_v16, %v799_v37  ;;  %v729_v41 = vadd.f32 %v713_v33, %v697_v35  ;;  %v678_v42 = vmul.f32 %v1240_v54, %v594_v36  ;;  %v960_v43 = vadd.f32 %v959_v39, %v958_v34 }
 0x11e   :  { %vm764_vm11 = vcmp.gt.f32.partialorder %v748_v38, 0.0  ;;  %v784_v44 = vmul.f32 %v1263_v8, %v748_v38  ;;  %v961_v46 = vpop.f32.mrf.mxu0 }
 0x11f   :  { %835 = vst [vmem:[%s1451_s4 + $0x50] sm:$0xff] %v819_v40  ;;  %v749_v48 = vsub.f32 %v729_v41, %v1255_v2  ;;  %v698_v49 = vadd.f32 %v1245_v56, %v678_v42  ;;  %v599_v50 = vadd.f32 %v1351_v47, %v960_v43  ;;  %v715_v47 = vld [vmem:[%s1450_s3 + $0x70] sm:$0xff] }
 0x120   :  { %v800_v51 = vsel %vm764_vm11, %v748_v38, %v784_v44  ;;  %v962_v52 = vpop.f32.mrf.mxu0 }
 0x121   :  { %v820_v53 = vadd.f32 %v1273_v16, %v800_v51  ;;  %vm765_vm12 = vcmp.gt.f32.partialorder %v749_v48, 0.0  ;;  %v785_v55 = vmul.f32 %v1263_v8, %v749_v48  ;;  %v730_v58 = vadd.f32 %v714_v45, %v698_v49 }
 0x122   :  { %v679_v59 = vmul.f32 %v1240_v54, %v599_v50  ;;  %v963_v60 = vadd.f32 %v962_v52, %v961_v46 }
 0x123   :  { %836 = vst [vmem:[%s1451_s4 + $0x58] sm:$0xff] %v820_v53  ;;  %v801_v61 = vsel %vm765_vm12, %v749_v48, %v785_v55  ;;  %v750_v62 = vsub.f32 %v730_v58, %v1255_v2 }
 0x124   :  { %v821_v63 = vadd.f32 %v1273_v16, %v801_v61  ;;  %v699_v0 = vadd.f32 %v1245_v56, %v679_v59  ;;  %v602_v1 = vadd.f32 %v1011_v15, %v963_v60 }
 0x125   :  { %vm766_vm13 = vcmp.gt.f32.partialorder %v750_v62, 0.0  ;;  %v786_v3 = vmul.f32 %v1263_v8, %v750_v62 }
 0x126   :  { %837 = vst [vmem:[%s1451_s4 + $0x60] sm:$0xff] %v821_v63  ;;  %v731_v5 = vadd.f32 %v715_v47, %v699_v0  ;;  %v680_v6 = vmul.f32 %v1240_v54, %v602_v1 }
 0x127   :  { %v802_v7 = vsel %vm766_vm13, %v750_v62, %v786_v3 }
 0x128   :  { %v822_v57 = vadd.f32 %v1273_v16, %v802_v7  ;;  %v751_v10 = vsub.f32 %v731_v5, %v1255_v2  ;;  %v700_v11 = vadd.f32 %v1245_v56, %v680_v6 }
 0x12a   :  { %838 = vst [vmem:[%s1451_s4 + $0x68] sm:$0xff] %v822_v57  ;;  %vm767_vm14 = vcmp.gt.f32.partialorder %v751_v10, 0.0  ;;  %v787_v12 = vmul.f32 %v1263_v8, %v751_v10  ;;  %v732_v13 = vadd.f32 %v716_v9, %v700_v11 }
 0x12c   :  { %v803_v54 = vsel %vm767_vm14, %v751_v10, %v787_v12  ;;  %v752_v14 = vsub.f32 %v732_v13, %v1255_v2 }
 0x12d   :  { %v823_v15 = vadd.f32 %v1273_v16, %v803_v54 }
 0x12e   :  { %vm768_vm15 = vcmp.gt.f32.partialorder %v752_v14, 0.0  ;;  %v788_v4 = vmul.f32 %v1263_v8, %v752_v14 }
 0x12f   :  { %839 = vst [vmem:[%s1451_s4 + $0x70] sm:$0xff] %v823_v15 }
 0x130   :  { %v804_v56 = vsel %vm768_vm15, %v752_v14, %v788_v4 }
 0x131   :  { %v824_v17 = vadd.f32 %v1273_v16, %v804_v56 }
 0x133   :  { %840 = vst [vmem:[%s1451_s4 + $0x78] sm:$0xff] %v824_v17 }

</bundles_post_ra>
